<compile_context>
chip_gen: v5e
topology: v5e:2x2
jax: 0.10.0
libtpu: 0.0.40
codegen_flags: <defaults>
</compile_context>

<pallas_src>
import math

import jax
import jax.numpy as jnp
from jax.experimental import pallas as pl
from jax.experimental.pallas import tpu as pltpu

LANE = 128
DEFAULT_TILE_B = 512  # 2 x 6 MiB double-buffered x tiles + weights: safe on v5e/v6e/v7x
                      # with the 32 MiB scoped-VMEM limit set below.


def _round_up(x, m):
    return (x + m - 1) // m * m


def mlp_kernel(x_ref, w1_ref, b1_ref, w2_ref, b2_ref, w3_ref, b3_ref, o_ref):
    x = x_ref[...]                                                    # (TB, 3072)

    # fc1 + relu  (output padded to 128 lanes; pad columns are zero)
    h1 = jnp.dot(x, w1_ref[...], preferred_element_type=jnp.float32) + b1_ref[...]
    h1 = jnp.maximum(h1, 0.0)                                         # (TB, 128)

    # fc2 + relu
    h2 = jnp.dot(h1, w2_ref[...], preferred_element_type=jnp.float32) + b2_ref[...]
    h2 = jnp.maximum(h2, 0.0)                                         # (TB, 128)

    # fc3  (pad lanes of b3 are -1e9, so their softmax contribution underflows to 0)
    logits = jnp.dot(h2, w3_ref[...], preferred_element_type=jnp.float32) + b3_ref[...]

    # numerically stable softmax over the (padded) feature lanes
    m = jnp.max(logits, axis=-1, keepdims=True)
    e = jnp.exp(logits - m)
    denom = jnp.sum(e, axis=-1, keepdims=True)
    o_ref[...] = e * pl.reciprocal(denom, approx=True)                # (TB, 128)


def _pad_weight(w, rows, cols):
    r, c = w.shape
    return jnp.pad(w, ((0, rows - r), (0, cols - c)))


def _pad_bias(b, cols, value=0.0):
    return jnp.pad(b, ((0, 0), (0, cols - b.shape[1])), constant_values=value)


def mlp_net(x, params, *, tile_b=DEFAULT_TILE_B):
    """x: (B, 3, 32, 32) float32 (NCHW).  Returns (B, 10) softmax probs."""
    w1, b1, w2, b2, w3, b3 = params
    B = x.shape[0]
    x_flat = x.reshape(B, -1).astype(jnp.float32)  # torch.flatten(x, 1)
    in_dim = x_flat.shape[1]                       # 3072
    n_out = w3.shape[1]                            # 10

    # Pad all feature widths to a lane-dense 128 so every store is an unmasked vst
    # and the MXU tiles are dense.
    w1p = _pad_weight(w1, in_dim, LANE)
    w2p = _pad_weight(w2, LANE, LANE)
    w3p = _pad_weight(w3, LANE, LANE)
    b1p = _pad_bias(b1, LANE, 0.0)
    b2p = _pad_bias(b2, LANE, 0.0)
    b3p = _pad_bias(b3, LANE, -1e9)

    # Batch tiling: 1-D grid over batch, weights resident across the grid.
    tb = min(tile_b, _round_up(B, 8))
    Bp = _round_up(B, tb)
    if Bp != B:
        x_flat = jnp.pad(x_flat, ((0, Bp - B), (0, 0)))
    grid = (Bp // tb,)

    flops = 2 * Bp * (in_dim * LANE + LANE * LANE + LANE * LANE)
    bytes_accessed = 4 * (Bp * in_dim + in_dim * LANE + 2 * LANE * LANE
                          + 3 * LANE + Bp * LANE)

    out = pl.pallas_call(
        mlp_kernel,
        out_shape=jax.ShapeDtypeStruct((Bp, LANE), jnp.float32),
        grid=grid,
        in_specs=[
            pl.BlockSpec((tb, in_dim), lambda i: (i, 0)),     # x: tiled over batch
            pl.BlockSpec((in_dim, LANE), lambda i: (0, 0)),   # w1 (resident)
            pl.BlockSpec((1, LANE), lambda i: (0, 0)),        # b1
            pl.BlockSpec((LANE, LANE), lambda i: (0, 0)),     # w2
            pl.BlockSpec((1, LANE), lambda i: (0, 0)),        # b2
            pl.BlockSpec((LANE, LANE), lambda i: (0, 0)),     # w3
            pl.BlockSpec((1, LANE), lambda i: (0, 0)),        # b3
        ],
        out_specs=pl.BlockSpec((tb, LANE), lambda i: (i, 0)),
        compiler_params=pltpu.CompilerParams(
            dimension_semantics=("parallel",),   # shard batch grid across v7x's 2 TCs
            vmem_limit_bytes=32 << 20,           # lets 512-row x tiles double-buffer on v5e
        ),
        cost_estimate=pl.CostEstimate(
            flops=flops,
            transcendentals=Bp * (LANE + 1),
            bytes_accessed=bytes_accessed,
        ),
    )(x_flat, w1p, b1p, w2p, b2p, w3p, b3p)

    return out[:B, :n_out]


def xavier_uniform(key, fan_in, fan_out):
    # matches torch.nn.init.xavier_uniform_ (gain=1); returned as (in, out)
    limit = math.sqrt(6.0 / (fan_in + fan_out))
    return jax.random.uniform(
        key, (fan_in, fan_out), jnp.float32, minval=-limit, maxval=limit
    )


def init_params(key):
    k1, k2, k3 = jax.random.split(key, 3)
    w1 = xavier_uniform(k1, 32 * 32 * 3, 120)
    w2 = xavier_uniform(k2, 120, 84)
    w3 = xavier_uniform(k3, 84, 10)
    b1 = jnp.full((1, 120), 0.01, jnp.float32)
    b2 = jnp.full((1, 84), 0.01, jnp.float32)
    b3 = jnp.full((1, 10), 0.01, jnp.float32)
    return w1, b1, w2, b2, w3, b3


if __name__ == "__main__":
    key = jax.random.PRNGKey(0)
    pkey, xkey = jax.random.split(key)

    params = init_params(pkey)
    x = jax.random.normal(xkey, (2, 3, 32, 32), jnp.float32)

    out = mlp_net(x, params)
    out = jax.block_until_ready(out)

    # sanity: plain-JAX f32 reference check (approx reciprocal => ~1e-3 tolerance)
    w1, b1, w2, b2, w3, b3 = params
    xf = x.reshape(x.shape[0], -1)
    ref = jax.nn.relu(xf @ w1 + b1)
    ref = jax.nn.relu(ref @ w2 + b2)
    ref = jax.nn.softmax(ref @ w3 + b3, axis=1)
    assert out.shape == (2, 10)
    assert jnp.allclose(out, ref, atol=2e-3), "mismatch vs reference"
    assert jnp.allclose(jnp.sum(out, axis=1), 1.0, atol=2e-3)

    print("KERNEL_OK")
</pallas_src>

<mosaic_0001>
module attributes {stable_mosaic.version = 11 : i64} {
  func.func @mlp_kernel(%arg0: i32, %arg1: memref<8x3072xf32, #tpu.memory_space<vmem>>, %arg2: memref<3072x128xf32, #tpu.memory_space<vmem>>, %arg3: memref<1x128xf32, #tpu.memory_space<vmem>>, %arg4: memref<128x128xf32, #tpu.memory_space<vmem>>, %arg5: memref<1x128xf32, #tpu.memory_space<vmem>>, %arg6: memref<128x128xf32, #tpu.memory_space<vmem>>, %arg7: memref<1x128xf32, #tpu.memory_space<vmem>>, %arg8: memref<8x128xf32, #tpu.memory_space<vmem>>) attributes {dimension_semantics = [#tpu.dimension_semantics<parallel>], iteration_bounds = array<i64: 1>, scalar_prefetch = 0 : i64, scratch_operands = 0 : i64, tpu.core_type = #tpu.core_type<tc>, window_params = [{transform_indices = @transform_0, window_bounds = array<i64: 8, 3072>}, {pipeline_mode = #tpu.pipeline_mode<synchronous>, transform_indices = @transform_1, window_bounds = array<i64: 3072, 128>}, {pipeline_mode = #tpu.pipeline_mode<synchronous>, transform_indices = @transform_2, window_bounds = array<i64: 1, 128>}, {pipeline_mode = #tpu.pipeline_mode<synchronous>, transform_indices = @transform_3, window_bounds = array<i64: 128, 128>}, {pipeline_mode = #tpu.pipeline_mode<synchronous>, transform_indices = @transform_4, window_bounds = array<i64: 1, 128>}, {pipeline_mode = #tpu.pipeline_mode<synchronous>, transform_indices = @transform_5, window_bounds = array<i64: 128, 128>}, {pipeline_mode = #tpu.pipeline_mode<synchronous>, transform_indices = @transform_6, window_bounds = array<i64: 1, 128>}, {transform_indices = @transform_7, window_bounds = array<i64: 8, 128>}]} {
    %c0 = arith.constant 0 : index
    %c0_0 = arith.constant 0 : index
    %0 = vector.load %arg1[%c0, %c0_0] : memref<8x3072xf32, #tpu.memory_space<vmem>>, vector<8x3072xf32>
    %c0_1 = arith.constant 0 : index
    %c0_2 = arith.constant 0 : index
    %1 = vector.load %arg2[%c0_1, %c0_2] : memref<3072x128xf32, #tpu.memory_space<vmem>>, vector<3072x128xf32>
    %cst = arith.constant dense<0.000000e+00> : vector<8x128xf32>
    %2 = tpu.matmul %0, %1, %cst {dimension_numbers = #tpu.dot_dimension_numbers<[1], [0], [0], [1], [0, 0, 1, 1], [], []>} : vector<8x3072xf32>, vector<3072x128xf32>, vector<8x128xf32> -> vector<8x128xf32>
    %c0_3 = arith.constant 0 : index
    %c0_4 = arith.constant 0 : index
    %3 = vector.load %arg3[%c0_3, %c0_4] : memref<1x128xf32, #tpu.memory_space<vmem>>, vector<1x128xf32>
    %4 = vector.broadcast %3 : vector<1x128xf32> to vector<8x128xf32>
    %5 = arith.addf %2, %4 : vector<8x128xf32>
    %cst_5 = arith.constant 0.000000e+00 : f32
    %6 = vector.broadcast %cst_5 : f32 to vector<8x128xf32>
    %7 = arith.maximumf %5, %6 : vector<8x128xf32>
    %c0_6 = arith.constant 0 : index
    %c0_7 = arith.constant 0 : index
    %8 = vector.load %arg4[%c0_6, %c0_7] : memref<128x128xf32, #tpu.memory_space<vmem>>, vector<128x128xf32>
    %cst_8 = arith.constant dense<0.000000e+00> : vector<8x128xf32>
    %9 = tpu.matmul %7, %8, %cst_8 {dimension_numbers = #tpu.dot_dimension_numbers<[1], [0], [0], [1], [0, 0, 1, 1], [], []>} : vector<8x128xf32>, vector<128x128xf32>, vector<8x128xf32> -> vector<8x128xf32>
    %c0_9 = arith.constant 0 : index
    %c0_10 = arith.constant 0 : index
    %10 = vector.load %arg5[%c0_9, %c0_10] : memref<1x128xf32, #tpu.memory_space<vmem>>, vector<1x128xf32>
    %11 = vector.broadcast %10 : vector<1x128xf32> to vector<8x128xf32>
    %12 = arith.addf %9, %11 : vector<8x128xf32>
    %cst_11 = arith.constant 0.000000e+00 : f32
    %13 = vector.broadcast %cst_11 : f32 to vector<8x128xf32>
    %14 = arith.maximumf %12, %13 : vector<8x128xf32>
    %c0_12 = arith.constant 0 : index
    %c0_13 = arith.constant 0 : index
    %15 = vector.load %arg6[%c0_12, %c0_13] : memref<128x128xf32, #tpu.memory_space<vmem>>, vector<128x128xf32>
    %cst_14 = arith.constant dense<0.000000e+00> : vector<8x128xf32>
    %16 = tpu.matmul %14, %15, %cst_14 {dimension_numbers = #tpu.dot_dimension_numbers<[1], [0], [0], [1], [0, 0, 1, 1], [], []>} : vector<8x128xf32>, vector<128x128xf32>, vector<8x128xf32> -> vector<8x128xf32>
    %c0_15 = arith.constant 0 : index
    %c0_16 = arith.constant 0 : index
    %17 = vector.load %arg7[%c0_15, %c0_16] : memref<1x128xf32, #tpu.memory_space<vmem>>, vector<1x128xf32>
    %18 = vector.broadcast %17 : vector<1x128xf32> to vector<8x128xf32>
    %19 = arith.addf %16, %18 : vector<8x128xf32>
    %cst_17 = arith.constant dense<0xFF800000> : vector<8xf32>
    %20 = vector.multi_reduction <maximumf>, %19, %cst_17 [1] : vector<8x128xf32> to vector<8xf32>
    %21 = vector.shape_cast %20 : vector<8xf32> to vector<8x1xf32>
    %22 = vector.broadcast %21 : vector<8x1xf32> to vector<8x128xf32>
    %23 = arith.subf %19, %22 : vector<8x128xf32>
    %24 = math.exp %23 : vector<8x128xf32>
    %cst_18 = arith.constant dense<0.000000e+00> : vector<8xf32>
    %25 = vector.multi_reduction <add>, %24, %cst_18 [1] : vector<8x128xf32> to vector<8xf32>
    %26 = vector.shape_cast %25 : vector<8xf32> to vector<8x1xf32>
    %27 = tpu.reciprocal %26 {approx = true} : vector<8x1xf32> -> vector<8x1xf32>
    %28 = vector.broadcast %27 : vector<8x1xf32> to vector<8x128xf32>
    %29 = arith.mulf %24, %28 : vector<8x128xf32>
    %c0_19 = arith.constant 0 : index
    %c0_20 = arith.constant 0 : index
    %30 = vector.load %arg8[%c0_19, %c0_20] : memref<8x128xf32, #tpu.memory_space<vmem>>, vector<8x128xf32>
    tpu.vector_store %arg8[%c0_19, %c0_20], %29 {strides = array<i32>} : memref<8x128xf32, #tpu.memory_space<vmem>>, vector<8x128xf32>,
    return
  }
  func.func @transform_0(%arg0: i32) -> (i32, i32) {
    %c0_i32 = arith.constant 0 : i32
    %c0_i32_0 = arith.constant 0 : i32
    return %arg0, %c0_i32 : i32, i32
  }
  func.func @transform_1(%arg0: i32) -> (i32, i32) {
    %c0_i32 = arith.constant 0 : i32
    %c0_i32_0 = arith.constant 0 : i32
    %c0_i32_1 = arith.constant 0 : i32
    return %c0_i32, %c0_i32_0 : i32, i32
  }
  func.func @transform_2(%arg0: i32) -> (i32, i32) {
    %c0_i32 = arith.constant 0 : i32
    %c0_i32_0 = arith.constant 0 : i32
    %c0_i32_1 = arith.constant 0 : i32
    return %c0_i32, %c0_i32_0 : i32, i32
  }
  func.func @transform_3(%arg0: i32) -> (i32, i32) {
    %c0_i32 = arith.constant 0 : i32
    %c0_i32_0 = arith.constant 0 : i32
    %c0_i32_1 = arith.constant 0 : i32
    return %c0_i32, %c0_i32_0 : i32, i32
  }
  func.func @transform_4(%arg0: i32) -> (i32, i32) {
    %c0_i32 = arith.constant 0 : i32
    %c0_i32_0 = arith.constant 0 : i32
    %c0_i32_1 = arith.constant 0 : i32
    return %c0_i32, %c0_i32_0 : i32, i32
  }
  func.func @transform_5(%arg0: i32) -> (i32, i32) {
    %c0_i32 = arith.constant 0 : i32
    %c0_i32_0 = arith.constant 0 : i32
    %c0_i32_1 = arith.constant 0 : i32
    return %c0_i32, %c0_i32_0 : i32, i32
  }
  func.func @transform_6(%arg0: i32) -> (i32, i32) {
    %c0_i32 = arith.constant 0 : i32
    %c0_i32_0 = arith.constant 0 : i32
    %c0_i32_1 = arith.constant 0 : i32
    return %c0_i32, %c0_i32_0 : i32, i32
  }
  func.func @transform_7(%arg0: i32) -> (i32, i32) {
    %c0_i32 = arith.constant 0 : i32
    %c0_i32_0 = arith.constant 0 : i32
    return %arg0, %c0_i32 : i32, i32
  }
}

</mosaic_0001>

<bundles_post_ra>
// kernel: tpu_custom_call.1
= control target key start
LH: loop header
LB: loop body
LE: loop exit
PB: predicated region body
PF: predicated region fallthrough
CT: control target
= control target key end

     0   :  { %12 = vsyncpa [#allocation3], 0  ;;  %s1425_s0 = inlined_call_operand.hbm [shape: f32[8,3072], index: 0, kind: input, shape index: {}]   ;;  %s1426_s1 = inlined_call_operand.hbm [shape: f32[3072,128], index: 1, kind: input, shape index: {}]   ;;  %s1427_s2 = inlined_call_operand.hbm [shape: f32[1,128], index: 2, kind: input, shape index: {}]   ;;  %s1428_s3 = inlined_call_operand.hbm [shape: f32[128,128], index: 3, kind: input, shape index: {}]   ;;  %s1429_s4 = inlined_call_operand.hbm [shape: f32[1,128], index: 4, kind: input, shape index: {}]   ;;  %s1430_s5 = inlined_call_operand.hbm [shape: f32[128,128], index: 5, kind: input, shape index: {}]   ;;  %s1431_s6 = inlined_call_operand.hbm [shape: f32[1,128], index: 6, kind: input, shape index: {}]   ;;  %s1432_s7 = inlined_call_operand.hbm [shape: f32[8,128], index: 7, kind: output, shape index: {}]  }
   0x1   :  { %13 = vsyncpa [#allocation6], 0 }
   0x2   :  { %14 = vsyncpa [#allocation9], 0 }
   0x3   :  { %15 = vsyncpa [#allocation12], 0  ;;  %s32_s26 = sshll.u32 %s1426_s1, 4  ;;  %s33_s26 = int_to_ptr.hbm [resolvable:$true] %s32_s26 }
   0x4   :  { %16 = vsyncpa [#allocation4], 0  ;;  %s1351_s27 = smov [#allocation5]   ;;  %s56_s8 = sshll.u32 %s1428_s3, 4  ;;  %s57_s8 = int_to_ptr.hbm [resolvable:$true] %s56_s8 }
   0x5   :  { %s34_s28 = sshll.u32 %s1351_s27, 4  ;;  %s1352_s9 = smov 128   ;;  %s35_s28 = int_to_ptr.vmem [resolvable:$true] %s34_s28 }
   0x6   :  { %s1353_s10 = smov 8   ;;  %s1354_s11 = smov [#allocation8]  }
   0x7   :  { %40 = dma.hbm_to_vmem [thread:$0]  %s33_s26, 49152, %s35_s28, [#allocation6], %s1352_s9, %s1352_s9, %s1353_s10  }
   0x8   :  { %s58_s12 = sshll.u32 %s1354_s11, 4  ;;  %s80_s15 = sshll.u32 %s1430_s5, 4  ;;  %s59_s12 = int_to_ptr.vmem [resolvable:$true] %s58_s12  ;;  %s81_s15 = int_to_ptr.hbm [resolvable:$true] %s80_s15 }
   0x9   :  { %64 = dma.hbm_to_vmem [thread:$0]  %s57_s8, 2048, %s59_s12, [#allocation9], %s1352_s9, %s1352_s9, %s1353_s10  }
   0xa   :  { %s22_s17 = sshll.u32 %s1425_s0, 4  ;;  %s1355_s18 = smov [#allocation11]   ;;  %s23_s17 = int_to_ptr.hbm [resolvable:$true] %s22_s17 }
   0xb   :  { %s82_s19 = sshll.u32 %s1355_s18, 4  ;;  %s1356_s3 = smov [#allocation2]   ;;  %s83_s19 = int_to_ptr.vmem [resolvable:$true] %s82_s19 }
   0xc   :  { %88 = dma.hbm_to_vmem [thread:$0]  %s81_s15, 2048, %s83_s19, [#allocation12], %s1352_s9, %s1352_s9, %s1353_s10  }
   0xd   :  { %s24_s20 = sshll.u32 %s1356_s3, 4  ;;  %s46_s23 = sshll.u32 %s1427_s2, 4  ;;  %s25_s20 = int_to_ptr.vmem [resolvable:$true] %s24_s20  ;;  %s47_s23 = int_to_ptr.hbm [resolvable:$true] %s46_s23 }
   0xe   :  { %27 = dma.hbm_to_vmem [thread:$0]  %s23_s17, 3072, %s25_s20, [#allocation3]  }
   0xf   :  { %s70_s25 = sshll.u32 %s1429_s4, 4  ;;  %s1357_s26 = smov [#allocation7]   ;;  %s71_s25 = int_to_ptr.hbm [resolvable:$true] %s70_s25 }
  0x10   :  { %s48_s0 = sshll.u32 %s1357_s26, 4  ;;  %s1358_s27 = smov [#allocation10]   ;;  %s49_s0 = int_to_ptr.vmem [resolvable:$true] %s48_s0 }
  0x11   :  { %51 = dma.hbm_to_vmem [thread:$0]  %s47_s23, 16, %s49_s0, [#allocation6]  }
  0x12   :  { %s72_s28 = sshll.u32 %s1358_s27, 4  ;;  %s94_s8 = sshll.u32 %s1431_s6, 4  ;;  %s73_s28 = int_to_ptr.vmem [resolvable:$true] %s72_s28  ;;  %s95_s8 = int_to_ptr.hbm [resolvable:$true] %s94_s8 }
  0x13   :  { %75 = dma.hbm_to_vmem [thread:$0]  %s71_s25, 16, %s73_s28, [#allocation9]  }
  0x14   :  { %s1359_s2 = smov [#allocation13]  }
  0x15   :  { %s96_s9 = sshll.u32 %s1359_s2, 4  ;;  %s97_s9 = int_to_ptr.vmem [resolvable:$true] %s96_s9 }
  0x16   :  { %99 = dma.hbm_to_vmem [thread:$0]  %s95_s8, 16, %s97_s9, [#allocation12]  }
  0x17   :  { %1341 = dma.done.wait [#allocation3], 3072  }
  0x18   :  { %1342 = vsyncadd [#allocation3], 4294964224 }
  0x19   :  { %1343 = dma.done.wait [#allocation6], 49168  }
  0x1a   :  { %1344 = vsyncadd [#allocation6], 4294918128 }
  0x1b   :  { %1345 = dma.done.wait [#allocation9], 2064  }
  0x1c   :  { %1346 = vsyncadd [#allocation9], 4294965232 }
  0x1d   :  { %1347 = dma.done.wait [#allocation12], 2064  }
  0x1e   :  { %1348 = vsyncadd [#allocation12], 4294965232  ;;  %v167_v0 = vld [vmem:[#allocation5 + $0x78] sm:$0xff]  ;;  %v166_v2 = vld [vmem:[#allocation5 + $0x70] sm:$0xff]  ;;  %s1360_s4 = smov [#allocation14]   ;;  %s1119_s12 = sshll.u32 %s1432_s7, 4  ;;  %s1120_s12 = int_to_ptr.hbm [resolvable:$true] %s1119_s12 }
  0x1f   :  { %v199_v1 = vld [vmem:[#allocation5 + $0x178] sm:$0xff]  ;;  %540 = vmatpush.msra.mxu0 %v167_v0  ;;  %v198_v4 = vld [vmem:[#allocation5 + $0x170] sm:$0xff]  ;;  %v165_v6 = vld [vmem:[#allocation5 + $0x68] sm:$0xff]  ;;  %s1117_s6 = sshll.u32 %s1360_s4, 4  ;;  %s1118_s6 = int_to_ptr.vmem [resolvable:$true] %s1117_s6 }
  0x20   :  { %580 = vmatpush.msra.mxu2 %v199_v1  ;;  %v183_v3 = vld [vmem:[#allocation5 + $0xf8] sm:$0xff]  ;;  %v182_v7 = vld [vmem:[#allocation5 + $0xf0] sm:$0xff]  ;;  %v197_v8 = vld [vmem:[#allocation5 + $0x168] sm:$0xff] }
  0x21   :  { %v215_v5 = vld [vmem:[#allocation5 + $0x1f8] sm:$0xff]  ;;  %560 = vmatpush.msra.mxu1 %v183_v3  ;;  %541 = vmatpush.msra.mxu0 %v166_v2  ;;  %v214_v9 = vld [vmem:[#allocation5 + $0x1f0] sm:$0xff]  ;;  %v181_v10 = vld [vmem:[#allocation5 + $0xe8] sm:$0xff] }
  0x22   :  { %600 = vmatpush.msra.mxu3 %v215_v5  ;;  %581 = vmatpush.msra.mxu2 %v198_v4  ;;  %v164_v11 = vld [vmem:[#allocation5 + $0x60] sm:$0xff]  ;;  %v213_v13 = vld [vmem:[#allocation5 + $0x1e8] sm:$0xff]  ;;  %v163_v16 = vld [vmem:[#allocation5 + $0x58] sm:$0xff] }
  0x23   :  { %561 = vmatpush.msra.mxu1 %v182_v7  ;;  %v196_v12 = vld [vmem:[#allocation5 + $0x160] sm:$0xff]  ;;  %542 = vmatpush.msra.mxu0 %v165_v6  ;;  %v195_v17 = vld [vmem:[#allocation5 + $0x158] sm:$0xff]  ;;  %v162_v20 = vld [vmem:[#allocation5 + $0x50] sm:$0xff] }
  0x24   :  { %601 = vmatpush.msra.mxu3 %v214_v9  ;;  %582 = vmatpush.msra.mxu2 %v197_v8  ;;  %v180_v14 = vld [vmem:[#allocation5 + $0xe0] sm:$0xff]  ;;  %v179_v18 = vld [vmem:[#allocation5 + $0xd8] sm:$0xff]  ;;  %v194_v21 = vld [vmem:[#allocation5 + $0x150] sm:$0xff] }
  0x25   :  { %v212_v15 = vld [vmem:[#allocation5 + $0x1e0] sm:$0xff]  ;;  %562 = vmatpush.msra.mxu1 %v181_v10  ;;  %543 = vmatpush.msra.mxu0 %v164_v11  ;;  %v211_v19 = vld [vmem:[#allocation5 + $0x1d8] sm:$0xff]  ;;  %v178_v22 = vld [vmem:[#allocation5 + $0xd0] sm:$0xff] }
  0x26   :  { %602 = vmatpush.msra.mxu3 %v213_v13  ;;  %583 = vmatpush.msra.mxu2 %v196_v12  ;;  %v210_v23 = vld [vmem:[#allocation5 + $0x1d0] sm:$0xff]  ;;  %v161_v24 = vld [vmem:[#allocation5 + $0x48] sm:$0xff]  ;;  %v160_v28 = vld [vmem:[#allocation5 + $0x40] sm:$0xff] }
  0x27   :  { %563 = vmatpush.msra.mxu1 %v180_v14  ;;  %544 = vmatpush.msra.mxu0 %v163_v16  ;;  %v193_v25 = vld [vmem:[#allocation5 + $0x148] sm:$0xff]  ;;  %v192_v29 = vld [vmem:[#allocation5 + $0x140] sm:$0xff]  ;;  %v159_v32 = vld [vmem:[#allocation5 + $0x38] sm:$0xff] }
  0x28   :  { %603 = vmatpush.msra.mxu3 %v212_v15  ;;  %584 = vmatpush.msra.mxu2 %v195_v17  ;;  %v177_v26 = vld [vmem:[#allocation5 + $0xc8] sm:$0xff]  ;;  %v176_v30 = vld [vmem:[#allocation5 + $0xc0] sm:$0xff]  ;;  %v191_v33 = vld [vmem:[#allocation5 + $0x138] sm:$0xff] }
  0x29   :  { %564 = vmatpush.msra.mxu1 %v179_v18  ;;  %545 = vmatpush.msra.mxu0 %v162_v20  ;;  %v209_v27 = vld [vmem:[#allocation5 + $0x1c8] sm:$0xff]  ;;  %v208_v31 = vld [vmem:[#allocation5 + $0x1c0] sm:$0xff]  ;;  %v175_v34 = vld [vmem:[#allocation5 + $0xb8] sm:$0xff] }
  0x2a   :  { %604 = vmatpush.msra.mxu3 %v211_v19  ;;  %585 = vmatpush.msra.mxu2 %v194_v21  ;;  %v207_v35 = vld [vmem:[#allocation5 + $0x1b8] sm:$0xff]  ;;  %v158_v36 = vld [vmem:[#allocation5 + $0x30] sm:$0xff]  ;;  %v157_v40 = vld [vmem:[#allocation5 + $0x28] sm:$0xff] }
  0x2b   :  { %565 = vmatpush.msra.mxu1 %v178_v22  ;;  %546 = vmatpush.msra.mxu0 %v161_v24  ;;  %v190_v37 = vld [vmem:[#allocation5 + $0x130] sm:$0xff]  ;;  %v189_v41 = vld [vmem:[#allocation5 + $0x128] sm:$0xff]  ;;  %v156_v44 = vld [vmem:[#allocation5 + $0x20] sm:$0xff] }
  0x2c   :  { %605 = vmatpush.msra.mxu3 %v210_v23  ;;  %586 = vmatpush.msra.mxu2 %v193_v25  ;;  %v174_v38 = vld [vmem:[#allocation5 + $0xb0] sm:$0xff]  ;;  %v173_v42 = vld [vmem:[#allocation5 + $0xa8] sm:$0xff]  ;;  %v188_v45 = vld [vmem:[#allocation5 + $0x120] sm:$0xff] }
  0x2d   :  { %566 = vmatpush.msra.mxu1 %v177_v26  ;;  %547 = vmatpush.msra.mxu0 %v160_v28  ;;  %v206_v39 = vld [vmem:[#allocation5 + $0x1b0] sm:$0xff]  ;;  %v205_v43 = vld [vmem:[#allocation5 + $0x1a8] sm:$0xff]  ;;  %v172_v46 = vld [vmem:[#allocation5 + $0xa0] sm:$0xff] }
  0x2e   :  { %606 = vmatpush.msra.mxu3 %v209_v27  ;;  %587 = vmatpush.msra.mxu2 %v192_v29  ;;  %v204_v47 = vld [vmem:[#allocation5 + $0x1a0] sm:$0xff]  ;;  %v155_v48 = vld [vmem:[#allocation5 + $0x18] sm:$0xff]  ;;  %v154_v52 = vld [vmem:[#allocation5 + $0x10] sm:$0xff] }
  0x2f   :  { %567 = vmatpush.msra.mxu1 %v176_v30  ;;  %548 = vmatpush.msra.mxu0 %v159_v32  ;;  %v187_v49 = vld [vmem:[#allocation5 + $0x118] sm:$0xff]  ;;  %v186_v53 = vld [vmem:[#allocation5 + $0x110] sm:$0xff]  ;;  %v153_v56 = vld [vmem:[#allocation5 + $0x8] sm:$0xff] }
  0x30   :  { %607 = vmatpush.msra.mxu3 %v208_v31  ;;  %588 = vmatpush.msra.mxu2 %v191_v33  ;;  %v171_v50 = vld [vmem:[#allocation5 + $0x98] sm:$0xff]  ;;  %v170_v54 = vld [vmem:[#allocation5 + $0x90] sm:$0xff]  ;;  %v185_v57 = vld [vmem:[#allocation5 + $0x108] sm:$0xff] }
  0x31   :  { %568 = vmatpush.msra.mxu1 %v175_v34  ;;  %549 = vmatpush.msra.mxu0 %v158_v36  ;;  %v203_v51 = vld [vmem:[#allocation5 + $0x198] sm:$0xff]  ;;  %v202_v55 = vld [vmem:[#allocation5 + $0x190] sm:$0xff]  ;;  %v169_v58 = vld [vmem:[#allocation5 + $0x88] sm:$0xff] }
  0x32   :  { %608 = vmatpush.msra.mxu3 %v207_v35  ;;  %589 = vmatpush.msra.mxu2 %v190_v37  ;;  %v201_v59 = vld [vmem:[#allocation5 + $0x188] sm:$0xff]  ;;  %v152_v60 = vld [vmem:[#allocation5] sm:$0xff]  ;;  %v231_v62 = vld [vmem:[#allocation5 + $0x278] sm:$0xff] }
  0x33   :  { %569 = vmatpush.msra.mxu1 %v174_v38  ;;  %550 = vmatpush.msra.mxu0 %v157_v40  ;;  %v184_v61 = vld [vmem:[#allocation5 + $0x100] sm:$0xff]  ;;  %v263_v63 = vld [vmem:[#allocation5 + $0x378] sm:$0xff]  ;;  %v230_v2 = vld [vmem:[#allocation5 + $0x270] sm:$0xff] }
  0x34   :  { %609 = vmatpush.msra.mxu3 %v206_v39  ;;  %590 = vmatpush.msra.mxu2 %v189_v41  ;;  %v168_v0 = vld [vmem:[#allocation5 + $0x80] sm:$0xff]  ;;  %v247_v3 = vld [vmem:[#allocation5 + $0x2f8] sm:$0xff]  ;;  %v262_v4 = vld [vmem:[#allocation5 + $0x370] sm:$0xff] }
  0x35   :  { %570 = vmatpush.msra.mxu1 %v173_v42  ;;  %551 = vmatpush.msra.mxu0 %v156_v44  ;;  %v200_v1 = vld [vmem:[#allocation5 + $0x180] sm:$0xff]  ;;  %v279_v5 = vld [vmem:[#allocation5 + $0x3f8] sm:$0xff]  ;;  %v229_v6 = vld [vmem:[#allocation5 + $0x268] sm:$0xff] }
  0x36   :  { %610 = vmatpush.msra.mxu3 %v205_v43  ;;  %591 = vmatpush.msra.mxu2 %v188_v45  ;;  %v246_v7 = vld [vmem:[#allocation5 + $0x2f0] sm:$0xff]  ;;  %v261_v8 = vld [vmem:[#allocation5 + $0x368] sm:$0xff]  ;;  %v228_v10 = vld [vmem:[#allocation5 + $0x260] sm:$0xff] }
  0x37   :  { %571 = vmatpush.msra.mxu1 %v172_v46  ;;  %552 = vmatpush.msra.mxu0 %v155_v48  ;;  %v278_v9 = vld [vmem:[#allocation5 + $0x3f0] sm:$0xff]  ;;  %v245_v11 = vld [vmem:[#allocation5 + $0x2e8] sm:$0xff]  ;;  %v260_v12 = vld [vmem:[#allocation5 + $0x360] sm:$0xff] }
  0x38   :  { %611 = vmatpush.msra.mxu3 %v204_v47  ;;  %592 = vmatpush.msra.mxu2 %v187_v49  ;;  %v277_v13 = vld [vmem:[#allocation5 + $0x3e8] sm:$0xff]  ;;  %v227_v14 = vld [vmem:[#allocation5 + $0x258] sm:$0xff]  ;;  %v244_v15 = vld [vmem:[#allocation5 + $0x2e0] sm:$0xff] }
  0x39   :  { %572 = vmatpush.msra.mxu1 %v171_v50  ;;  %553 = vmatpush.msra.mxu0 %v154_v52  ;;  %v259_v16 = vld [vmem:[#allocation5 + $0x358] sm:$0xff]  ;;  %v276_v17 = vld [vmem:[#allocation5 + $0x3e0] sm:$0xff]  ;;  %v226_v18 = vld [vmem:[#allocation5 + $0x250] sm:$0xff] }
  0x3a   :  { %612 = vmatpush.msra.mxu3 %v203_v51  ;;  %593 = vmatpush.msra.mxu2 %v186_v53  ;;  %v243_v19 = vld [vmem:[#allocation5 + $0x2d8] sm:$0xff]  ;;  %v258_v20 = vld [vmem:[#allocation5 + $0x350] sm:$0xff]  ;;  %v225_v22 = vld [vmem:[#allocation5 + $0x248] sm:$0xff] }
  0x3b   :  { %573 = vmatpush.msra.mxu1 %v170_v54  ;;  %554 = vmatpush.msra.mxu0 %v153_v56  ;;  %v275_v21 = vld [vmem:[#allocation5 + $0x3d8] sm:$0xff]  ;;  %v242_v23 = vld [vmem:[#allocation5 + $0x2d0] sm:$0xff]  ;;  %v257_v24 = vld [vmem:[#allocation5 + $0x348] sm:$0xff] }
  0x3c   :  { %613 = vmatpush.msra.mxu3 %v202_v55  ;;  %594 = vmatpush.msra.mxu2 %v185_v57  ;;  %v274_v25 = vld [vmem:[#allocation5 + $0x3d0] sm:$0xff]  ;;  %v224_v26 = vld [vmem:[#allocation5 + $0x240] sm:$0xff]  ;;  %v241_v27 = vld [vmem:[#allocation5 + $0x2c8] sm:$0xff] }
  0x3d   :  { %574 = vmatpush.msra.mxu1 %v169_v58  ;;  %555 = vmatpush.msra.mxu0 %v152_v60  ;;  %v256_v28 = vld [vmem:[#allocation5 + $0x340] sm:$0xff]  ;;  %v273_v29 = vld [vmem:[#allocation5 + $0x3c8] sm:$0xff]  ;;  %v223_v30 = vld [vmem:[#allocation5 + $0x238] sm:$0xff] }
  0x3e   :  { %614 = vmatpush.msra.mxu3 %v201_v59  ;;  %595 = vmatpush.msra.mxu2 %v184_v61  ;;  %v240_v31 = vld [vmem:[#allocation5 + $0x2c0] sm:$0xff]  ;;  %v255_v32 = vld [vmem:[#allocation5 + $0x338] sm:$0xff]  ;;  %v222_v34 = vld [vmem:[#allocation5 + $0x230] sm:$0xff] }
  0x3f   :  { %620 = vmatpush.msrb.mxu0 %v231_v62  ;;  %575 = vmatpush.msra.mxu1 %v168_v0  ;;  %v272_v33 = vld [vmem:[#allocation5 + $0x3c0] sm:$0xff]  ;;  %v239_v35 = vld [vmem:[#allocation5 + $0x2b8] sm:$0xff]  ;;  %v254_v36 = vld [vmem:[#allocation5 + $0x330] sm:$0xff] }
  0x40   :  { %660 = vmatpush.msrb.mxu2 %v263_v63  ;;  %615 = vmatpush.msra.mxu3 %v200_v1  ;;  %v271_v37 = vld [vmem:[#allocation5 + $0x3b8] sm:$0xff]  ;;  %v221_v38 = vld [vmem:[#allocation5 + $0x228] sm:$0xff]  ;;  %v238_v39 = vld [vmem:[#allocation5 + $0x2b0] sm:$0xff] }
  0x41   :  { %621 = vmatpush.msrb.mxu0 %v230_v2  ;;  %640 = vmatpush.msrb.mxu1 %v247_v3  ;;  %v253_v40 = vld [vmem:[#allocation5 + $0x328] sm:$0xff]  ;;  %v270_v41 = vld [vmem:[#allocation5 + $0x3b0] sm:$0xff]  ;;  %v220_v42 = vld [vmem:[#allocation5 + $0x220] sm:$0xff] }
  0x42   :  { %661 = vmatpush.msrb.mxu2 %v262_v4  ;;  %680 = vmatpush.msrb.mxu3 %v279_v5  ;;  %v237_v43 = vld [vmem:[#allocation5 + $0x2a8] sm:$0xff]  ;;  %v252_v44 = vld [vmem:[#allocation5 + $0x320] sm:$0xff]  ;;  %v219_v46 = vld [vmem:[#allocation5 + $0x218] sm:$0xff] }
  0x43   :  { %622 = vmatpush.msrb.mxu0 %v229_v6  ;;  %641 = vmatpush.msrb.mxu1 %v246_v7  ;;  %v269_v45 = vld [vmem:[#allocation5 + $0x3a8] sm:$0xff]  ;;  %v236_v47 = vld [vmem:[#allocation5 + $0x2a0] sm:$0xff]  ;;  %v251_v48 = vld [vmem:[#allocation5 + $0x318] sm:$0xff] }
  0x44   :  { %662 = vmatpush.msrb.mxu2 %v261_v8  ;;  %681 = vmatpush.msrb.mxu3 %v278_v9  ;;  %v268_v49 = vld [vmem:[#allocation5 + $0x3a0] sm:$0xff]  ;;  %v218_v50 = vld [vmem:[#allocation5 + $0x210] sm:$0xff]  ;;  %v235_v51 = vld [vmem:[#allocation5 + $0x298] sm:$0xff] }
  0x45   :  { %623 = vmatpush.msrb.mxu0 %v228_v10  ;;  %642 = vmatpush.msrb.mxu1 %v245_v11  ;;  %v250_v52 = vld [vmem:[#allocation5 + $0x310] sm:$0xff]  ;;  %v267_v53 = vld [vmem:[#allocation5 + $0x398] sm:$0xff]  ;;  %v217_v54 = vld [vmem:[#allocation5 + $0x208] sm:$0xff] }
  0x46   :  { %663 = vmatpush.msrb.mxu2 %v260_v12  ;;  %682 = vmatpush.msrb.mxu3 %v277_v13  ;;  %v234_v55 = vld [vmem:[#allocation5 + $0x290] sm:$0xff]  ;;  %v249_v56 = vld [vmem:[#allocation5 + $0x308] sm:$0xff]  ;;  %v216_v58 = vld [vmem:[#allocation5 + $0x200] sm:$0xff] }
  0x47   :  { %624 = vmatpush.msrb.mxu0 %v227_v14  ;;  %643 = vmatpush.msrb.mxu1 %v244_v15  ;;  %v266_v57 = vld [vmem:[#allocation5 + $0x390] sm:$0xff]  ;;  %v233_v59 = vld [vmem:[#allocation5 + $0x288] sm:$0xff]  ;;  %v248_v60 = vld [vmem:[#allocation5 + $0x300] sm:$0xff] }
  0x48   :  { %664 = vmatpush.msrb.mxu2 %v259_v16  ;;  %683 = vmatpush.msrb.mxu3 %v276_v17  ;;  %v265_v61 = vld [vmem:[#allocation5 + $0x388] sm:$0xff]  ;;  %v128_v62 = vld [vmem:[#allocation2] sm:$0xff]  ;;  %v130_v63 = vld [vmem:[#allocation2 + $0x10] sm:$0xff] }
  0x49   :  { %625 = vmatpush.msrb.mxu0 %v226_v18  ;;  %644 = vmatpush.msrb.mxu1 %v243_v19  ;;  %v295_v0 = vld [vmem:[#allocation5 + $0x478] sm:$0xff]  ;;  %v232_v2 = vld [vmem:[#allocation5 + $0x280] sm:$0xff]  ;;  %v129_v4 = vld [vmem:[#allocation2 + $0x8] sm:$0xff] }
  0x4a   :  { %665 = vmatpush.msrb.mxu2 %v258_v20  ;;  %684 = vmatpush.msrb.mxu3 %v275_v21  ;;  %v327_v1 = vld [vmem:[#allocation5 + $0x578] sm:$0xff]  ;;  %v264_v3 = vld [vmem:[#allocation5 + $0x380] sm:$0xff]  ;;  %v294_v6 = vld [vmem:[#allocation5 + $0x470] sm:$0xff] }
  0x4b   :  { %626 = vmatpush.msrb.mxu0 %v225_v22  ;;  %645 = vmatpush.msrb.mxu1 %v242_v23  ;;  %v131_v5 = vld [vmem:[#allocation2 + $0x18] sm:$0xff]  ;;  %v326_v8 = vld [vmem:[#allocation5 + $0x570] sm:$0xff]  ;;  %v293_v10 = vld [vmem:[#allocation5 + $0x468] sm:$0xff] }
  0x4c   :  { %666 = vmatpush.msrb.mxu2 %v257_v24  ;;  %685 = vmatpush.msrb.mxu3 %v274_v25  ;;  %v311_v7 = vld [vmem:[#allocation5 + $0x4f8] sm:$0xff]  ;;  %v310_v11 = vld [vmem:[#allocation5 + $0x4f0] sm:$0xff]  ;;  %v325_v12 = vld [vmem:[#allocation5 + $0x568] sm:$0xff] }
  0x4d   :  { %627 = vmatpush.msrb.mxu0 %v224_v26  ;;  %646 = vmatpush.msrb.mxu1 %v241_v27  ;;  %v343_v9 = vld [vmem:[#allocation5 + $0x5f8] sm:$0xff]  ;;  %v342_v13 = vld [vmem:[#allocation5 + $0x5f0] sm:$0xff]  ;;  %v292_v14 = vld [vmem:[#allocation5 + $0x460] sm:$0xff] }
  0x4e   :  { %667 = vmatpush.msrb.mxu2 %v256_v28  ;;  %686 = vmatpush.msrb.mxu3 %v273_v29  ;;  %v309_v15 = vld [vmem:[#allocation5 + $0x4e8] sm:$0xff]  ;;  %v324_v16 = vld [vmem:[#allocation5 + $0x560] sm:$0xff]  ;;  %v134_v18 = vld [vmem:[#allocation2 + $0x30] sm:$0xff] }
  0x4f   :  { %628 = vmatpush.msrb.mxu0 %v223_v30  ;;  %647 = vmatpush.msrb.mxu1 %v240_v31  ;;  %v341_v17 = vld [vmem:[#allocation5 + $0x5e8] sm:$0xff]  ;;  %v291_v19 = vld [vmem:[#allocation5 + $0x458] sm:$0xff]  ;;  %v308_v20 = vld [vmem:[#allocation5 + $0x4e0] sm:$0xff] }
  0x50   :  { %668 = vmatpush.msrb.mxu2 %v255_v32  ;;  %687 = vmatpush.msrb.mxu3 %v272_v33  ;;  %v323_v21 = vld [vmem:[#allocation5 + $0x558] sm:$0xff]  ;;  %v340_v22 = vld [vmem:[#allocation5 + $0x5e0] sm:$0xff]  ;;  %v290_v25 = vld [vmem:[#allocation5 + $0x450] sm:$0xff] }
  0x51   :  { %629 = vmatpush.msrb.mxu0 %v222_v34  ;;  %648 = vmatpush.msrb.mxu1 %v239_v35  ;;  %v132_v23 = vld [vmem:[#allocation2 + $0x20] sm:$0xff]  ;;  %v135_v24 = vld [vmem:[#allocation2 + $0x38] sm:$0xff]  ;;  %v322_v27 = vld [vmem:[#allocation5 + $0x550] sm:$0xff] }
  0x52   :  { %669 = vmatpush.msrb.mxu2 %v254_v36  ;;  %688 = vmatpush.msrb.mxu3 %v271_v37  ;;  %v307_v26 = vld [vmem:[#allocation5 + $0x4d8] sm:$0xff]  ;;  %v133_v29 = vld [vmem:[#allocation2 + $0x28] sm:$0xff]  ;;  %v306_v31 = vld [vmem:[#allocation5 + $0x4d0] sm:$0xff] }
  0x53   :  { %630 = vmatpush.msrb.mxu0 %v221_v38  ;;  %649 = vmatpush.msrb.mxu1 %v238_v39  ;;  %v339_v28 = vld [vmem:[#allocation5 + $0x5d8] sm:$0xff]  ;;  %v289_v30 = vld [vmem:[#allocation5 + $0x448] sm:$0xff]  ;;  %v338_v33 = vld [vmem:[#allocation5 + $0x5d0] sm:$0xff] }
  0x54   :  { %670 = vmatpush.msrb.mxu2 %v253_v40  ;;  %689 = vmatpush.msrb.mxu3 %v270_v41  ;;  %v321_v32 = vld [vmem:[#allocation5 + $0x548] sm:$0xff]  ;;  %v288_v34 = vld [vmem:[#allocation5 + $0x440] sm:$0xff]  ;;  %v287_v38 = vld [vmem:[#allocation5 + $0x438] sm:$0xff] }
  0x55   :  { %631 = vmatpush.msrb.mxu0 %v220_v42  ;;  %650 = vmatpush.msrb.mxu1 %v237_v43  ;;  %v305_v35 = vld [vmem:[#allocation5 + $0x4c8] sm:$0xff]  ;;  %v320_v36 = vld [vmem:[#allocation5 + $0x540] sm:$0xff]  ;;  %v319_v40 = vld [vmem:[#allocation5 + $0x538] sm:$0xff] }
  0x56   :  { %671 = vmatpush.msrb.mxu2 %v252_v44  ;;  %690 = vmatpush.msrb.mxu3 %v269_v45  ;;  %v337_v37 = vld [vmem:[#allocation5 + $0x5c8] sm:$0xff]  ;;  %v304_v39 = vld [vmem:[#allocation5 + $0x4c0] sm:$0xff]  ;;  %v286_v42 = vld [vmem:[#allocation5 + $0x430] sm:$0xff] }
  0x57   :  { %632 = vmatpush.msrb.mxu0 %v219_v46  ;;  %651 = vmatpush.msrb.mxu1 %v236_v47  ;;  %v336_v41 = vld [vmem:[#allocation5 + $0x5c0] sm:$0xff]  ;;  %v303_v43 = vld [vmem:[#allocation5 + $0x4b8] sm:$0xff]  ;;  %v318_v44 = vld [vmem:[#allocation5 + $0x530] sm:$0xff] }
  0x58   :  { %672 = vmatpush.msrb.mxu2 %v251_v48  ;;  %691 = vmatpush.msrb.mxu3 %v268_v49  ;;  %v335_v45 = vld [vmem:[#allocation5 + $0x5b8] sm:$0xff]  ;;  %v285_v46 = vld [vmem:[#allocation5 + $0x428] sm:$0xff]  ;;  %v302_v47 = vld [vmem:[#allocation5 + $0x4b0] sm:$0xff] }
  0x59   :  { %633 = vmatpush.msrb.mxu0 %v218_v50  ;;  %652 = vmatpush.msrb.mxu1 %v235_v51  ;;  %v317_v48 = vld [vmem:[#allocation5 + $0x528] sm:$0xff]  ;;  %v334_v49 = vld [vmem:[#allocation5 + $0x5b0] sm:$0xff]  ;;  %v284_v50 = vld [vmem:[#allocation5 + $0x420] sm:$0xff] }
  0x5a   :  { %673 = vmatpush.msrb.mxu2 %v250_v52  ;;  %692 = vmatpush.msrb.mxu3 %v267_v53  ;;  %v301_v51 = vld [vmem:[#allocation5 + $0x4a8] sm:$0xff]  ;;  %v316_v52 = vld [vmem:[#allocation5 + $0x520] sm:$0xff] }
  0x5b   :  { %634 = vmatpush.msrb.mxu0 %v217_v54  ;;  %653 = vmatpush.msrb.mxu1 %v234_v55  ;;  %v333_v53 = vld [vmem:[#allocation5 + $0x5a8] sm:$0xff]  ;;  %v283_v54 = vld [vmem:[#allocation5 + $0x418] sm:$0xff]  ;;  %v300_v55 = vld [vmem:[#allocation5 + $0x4a0] sm:$0xff] }
  0x5c   :  { %674 = vmatpush.msrb.mxu2 %v249_v56  ;;  %693 = vmatpush.msrb.mxu3 %v266_v57  ;;  %v315_v56 = vld [vmem:[#allocation5 + $0x518] sm:$0xff]  ;;  %v332_v57 = vld [vmem:[#allocation5 + $0x5a0] sm:$0xff] }
  0x5d   :  { %635 = vmatpush.msrb.mxu0 %v216_v58  ;;  %654 = vmatpush.msrb.mxu1 %v233_v59  ;;  %v282_v58 = vld [vmem:[#allocation5 + $0x410] sm:$0xff]  ;;  %v299_v59 = vld [vmem:[#allocation5 + $0x498] sm:$0xff] }
  0x5e   :  { %675 = vmatpush.msrb.mxu2 %v248_v60  ;;  %694 = vmatpush.msrb.mxu3 %v265_v61  ;;  %v314_v60 = vld [vmem:[#allocation5 + $0x510] sm:$0xff]  ;;  %v331_v61 = vld [vmem:[#allocation5 + $0x598] sm:$0xff] }
  0x5f   :  { %556 = vmatmul.f32.vlgmr.msra.gmra.mxu0 %v128_v62  ;;  %596 = vmatmul.f32.vlgmr.msra.gmra.mxu2 %v130_v63  ;;  %v281_v62 = vld [vmem:[#allocation5 + $0x408] sm:$0xff]  ;;  %v298_v63 = vld [vmem:[#allocation5 + $0x490] sm:$0xff] }
  0x60   :  { %700 = vmatpush.msra.mxu0 %v295_v0  ;;  %740 = vmatpush.msra.mxu2 %v327_v1  ;;  %v313_v0 = vld [vmem:[#allocation5 + $0x508] sm:$0xff]  ;;  %v330_v1 = vld [vmem:[#allocation5 + $0x590] sm:$0xff] }
  0x61   :  { %655 = vmatpush.msrb.mxu1 %v232_v2  ;;  %695 = vmatpush.msrb.mxu3 %v264_v3  ;;  %v280_v2 = vld [vmem:[#allocation5 + $0x400] sm:$0xff]  ;;  %v297_v3 = vld [vmem:[#allocation5 + $0x488] sm:$0xff] }
  0x62   :  { %576 = vmatmul.f32.vlgmr.msra.gmra.mxu1 %v129_v4  ;;  %616 = vmatmul.f32.vlgmr.msra.gmra.mxu3 %v131_v5  ;;  %v312_v4 = vld [vmem:[#allocation5 + $0x500] sm:$0xff]  ;;  %v329_v5 = vld [vmem:[#allocation5 + $0x588] sm:$0xff] }
  0x63   :  { %701 = vmatpush.msra.mxu0 %v294_v6  ;;  %720 = vmatpush.msra.mxu1 %v311_v7  ;;  %v136_v6 = vld [vmem:[#allocation2 + $0x40] sm:$0xff]  ;;  %v138_v7 = vld [vmem:[#allocation2 + $0x50] sm:$0xff] }
  0x64   :  { %741 = vmatpush.msra.mxu2 %v326_v8  ;;  %760 = vmatpush.msra.mxu3 %v343_v9  ;;  %v359_v8 = vld [vmem:[#allocation5 + $0x678] sm:$0xff] }
  0x65   :  { %702 = vmatpush.msra.mxu0 %v293_v10  ;;  %721 = vmatpush.msra.mxu1 %v310_v11  ;;  %v391_v9 = vld [vmem:[#allocation5 + $0x778] sm:$0xff]  ;;  %v296_v10 = vld [vmem:[#allocation5 + $0x480] sm:$0xff] }
  0x66   :  { %742 = vmatpush.msra.mxu2 %v325_v12  ;;  %761 = vmatpush.msra.mxu3 %v342_v13  ;;  %v328_v11 = vld [vmem:[#allocation5 + $0x580] sm:$0xff]  ;;  %v137_v12 = vld [vmem:[#allocation2 + $0x48] sm:$0xff]  ;;  %v139_v13 = vld [vmem:[#allocation2 + $0x58] sm:$0xff] }
  0x67   :  { %703 = vmatpush.msra.mxu0 %v292_v14  ;;  %722 = vmatpush.msra.mxu1 %v309_v15  ;;  %v358_v14 = vld [vmem:[#allocation5 + $0x670] sm:$0xff]  ;;  %v375_v15 = vld [vmem:[#allocation5 + $0x6f8] sm:$0xff] }
  0x68   :  { %743 = vmatpush.msra.mxu2 %v324_v16  ;;  %762 = vmatpush.msra.mxu3 %v341_v17  ;;  %v390_v16 = vld [vmem:[#allocation5 + $0x770] sm:$0xff]  ;;  %v407_v17 = vld [vmem:[#allocation5 + $0x7f8] sm:$0xff] }
  0x69   :  { %676 = vmatmul.f32.vlgmr.msrb.gmra.mxu2 %v134_v18  ;;  %704 = vmatpush.msra.mxu0 %v291_v19  ;;  %v357_v18 = vld [vmem:[#allocation5 + $0x668] sm:$0xff]  ;;  %v374_v19 = vld [vmem:[#allocation5 + $0x6f0] sm:$0xff] }
  0x6a   :  { %723 = vmatpush.msra.mxu1 %v308_v20  ;;  %744 = vmatpush.msra.mxu2 %v323_v21  ;;  %v389_v20 = vld [vmem:[#allocation5 + $0x768] sm:$0xff]  ;;  %v406_v21 = vld [vmem:[#allocation5 + $0x7f0] sm:$0xff] }
  0x6b   :  { %763 = vmatpush.msra.mxu3 %v340_v22  ;;  %636 = vmatmul.f32.vlgmr.msrb.gmra.mxu0 %v132_v23  ;;  %v356_v22 = vld [vmem:[#allocation5 + $0x660] sm:$0xff]  ;;  %v373_v23 = vld [vmem:[#allocation5 + $0x6e8] sm:$0xff] }
  0x6c   :  { %696 = vmatmul.f32.vlgmr.msrb.gmra.mxu3 %v135_v24  ;;  %705 = vmatpush.msra.mxu0 %v290_v25  ;;  %v388_v24 = vld [vmem:[#allocation5 + $0x760] sm:$0xff]  ;;  %v405_v25 = vld [vmem:[#allocation5 + $0x7e8] sm:$0xff] }
  0x6d   :  { %724 = vmatpush.msra.mxu1 %v307_v26  ;;  %745 = vmatpush.msra.mxu2 %v322_v27  ;;  %v355_v26 = vld [vmem:[#allocation5 + $0x658] sm:$0xff]  ;;  %v372_v27 = vld [vmem:[#allocation5 + $0x6e0] sm:$0xff] }
  0x6e   :  { %764 = vmatpush.msra.mxu3 %v339_v28  ;;  %656 = vmatmul.f32.vlgmr.msrb.gmra.mxu1 %v133_v29  ;;  %v387_v28 = vld [vmem:[#allocation5 + $0x758] sm:$0xff]  ;;  %v404_v29 = vld [vmem:[#allocation5 + $0x7e0] sm:$0xff] }
  0x6f   :  { %706 = vmatpush.msra.mxu0 %v289_v30  ;;  %725 = vmatpush.msra.mxu1 %v306_v31  ;;  %v354_v30 = vld [vmem:[#allocation5 + $0x650] sm:$0xff]  ;;  %v371_v31 = vld [vmem:[#allocation5 + $0x6d8] sm:$0xff] }
  0x70   :  { %746 = vmatpush.msra.mxu2 %v321_v32  ;;  %765 = vmatpush.msra.mxu3 %v338_v33  ;;  %v386_v32 = vld [vmem:[#allocation5 + $0x750] sm:$0xff]  ;;  %v403_v33 = vld [vmem:[#allocation5 + $0x7d8] sm:$0xff] }
  0x71   :  { %707 = vmatpush.msra.mxu0 %v288_v34  ;;  %726 = vmatpush.msra.mxu1 %v305_v35  ;;  %v353_v34 = vld [vmem:[#allocation5 + $0x648] sm:$0xff]  ;;  %v370_v35 = vld [vmem:[#allocation5 + $0x6d0] sm:$0xff] }
  0x72   :  { %747 = vmatpush.msra.mxu2 %v320_v36  ;;  %766 = vmatpush.msra.mxu3 %v337_v37  ;;  %v385_v36 = vld [vmem:[#allocation5 + $0x748] sm:$0xff]  ;;  %v402_v37 = vld [vmem:[#allocation5 + $0x7d0] sm:$0xff] }
  0x73   :  { %708 = vmatpush.msra.mxu0 %v287_v38  ;;  %727 = vmatpush.msra.mxu1 %v304_v39  ;;  %v352_v38 = vld [vmem:[#allocation5 + $0x640] sm:$0xff]  ;;  %v369_v39 = vld [vmem:[#allocation5 + $0x6c8] sm:$0xff] }
  0x74   :  { %748 = vmatpush.msra.mxu2 %v319_v40  ;;  %767 = vmatpush.msra.mxu3 %v336_v41  ;;  %v384_v40 = vld [vmem:[#allocation5 + $0x740] sm:$0xff]  ;;  %v401_v41 = vld [vmem:[#allocation5 + $0x7c8] sm:$0xff] }
  0x75   :  { %709 = vmatpush.msra.mxu0 %v286_v42  ;;  %728 = vmatpush.msra.mxu1 %v303_v43  ;;  %v351_v42 = vld [vmem:[#allocation5 + $0x638] sm:$0xff]  ;;  %v368_v43 = vld [vmem:[#allocation5 + $0x6c0] sm:$0xff] }
  0x76   :  { %749 = vmatpush.msra.mxu2 %v318_v44  ;;  %768 = vmatpush.msra.mxu3 %v335_v45  ;;  %v383_v44 = vld [vmem:[#allocation5 + $0x738] sm:$0xff]  ;;  %v400_v45 = vld [vmem:[#allocation5 + $0x7c0] sm:$0xff] }
  0x77   :  { %710 = vmatpush.msra.mxu0 %v285_v46  ;;  %729 = vmatpush.msra.mxu1 %v302_v47  ;;  %v350_v46 = vld [vmem:[#allocation5 + $0x630] sm:$0xff]  ;;  %v367_v47 = vld [vmem:[#allocation5 + $0x6b8] sm:$0xff] }
  0x78   :  { %750 = vmatpush.msra.mxu2 %v317_v48  ;;  %769 = vmatpush.msra.mxu3 %v334_v49  ;;  %v382_v48 = vld [vmem:[#allocation5 + $0x730] sm:$0xff]  ;;  %v399_v49 = vld [vmem:[#allocation5 + $0x7b8] sm:$0xff] }
  0x79   :  { %711 = vmatpush.msra.mxu0 %v284_v50  ;;  %730 = vmatpush.msra.mxu1 %v301_v51  ;;  %v349_v50 = vld [vmem:[#allocation5 + $0x628] sm:$0xff]  ;;  %v366_v51 = vld [vmem:[#allocation5 + $0x6b0] sm:$0xff] }
  0x7a   :  { %751 = vmatpush.msra.mxu2 %v316_v52  ;;  %770 = vmatpush.msra.mxu3 %v333_v53  ;;  %v381_v52 = vld [vmem:[#allocation5 + $0x728] sm:$0xff]  ;;  %v398_v53 = vld [vmem:[#allocation5 + $0x7b0] sm:$0xff] }
  0x7b   :  { %712 = vmatpush.msra.mxu0 %v283_v54  ;;  %731 = vmatpush.msra.mxu1 %v300_v55  ;;  %v348_v54 = vld [vmem:[#allocation5 + $0x620] sm:$0xff]  ;;  %v365_v55 = vld [vmem:[#allocation5 + $0x6a8] sm:$0xff] }
  0x7c   :  { %752 = vmatpush.msra.mxu2 %v315_v56  ;;  %771 = vmatpush.msra.mxu3 %v332_v57  ;;  %v380_v56 = vld [vmem:[#allocation5 + $0x720] sm:$0xff]  ;;  %v397_v57 = vld [vmem:[#allocation5 + $0x7a8] sm:$0xff] }
  0x7d   :  { %713 = vmatpush.msra.mxu0 %v282_v58  ;;  %732 = vmatpush.msra.mxu1 %v299_v59  ;;  %v347_v58 = vld [vmem:[#allocation5 + $0x618] sm:$0xff]  ;;  %v364_v59 = vld [vmem:[#allocation5 + $0x6a0] sm:$0xff] }
  0x7e   :  { %753 = vmatpush.msra.mxu2 %v314_v60  ;;  %772 = vmatpush.msra.mxu3 %v331_v61  ;;  %v379_v60 = vld [vmem:[#allocation5 + $0x718] sm:$0xff]  ;;  %v396_v61 = vld [vmem:[#allocation5 + $0x7a0] sm:$0xff] }
  0x7f   :  { %714 = vmatpush.msra.mxu0 %v281_v62  ;;  %733 = vmatpush.msra.mxu1 %v298_v63  ;;  %v346_v62 = vld [vmem:[#allocation5 + $0x610] sm:$0xff]  ;;  %v363_v63 = vld [vmem:[#allocation5 + $0x698] sm:$0xff] }
  0x80   :  { %754 = vmatpush.msra.mxu2 %v313_v0  ;;  %773 = vmatpush.msra.mxu3 %v330_v1  ;;  %v378_v0 = vld [vmem:[#allocation5 + $0x710] sm:$0xff]  ;;  %v395_v1 = vld [vmem:[#allocation5 + $0x798] sm:$0xff] }
  0x81   :  { %715 = vmatpush.msra.mxu0 %v280_v2  ;;  %734 = vmatpush.msra.mxu1 %v297_v3  ;;  %v345_v2 = vld [vmem:[#allocation5 + $0x608] sm:$0xff]  ;;  %v362_v3 = vld [vmem:[#allocation5 + $0x690] sm:$0xff] }
  0x82   :  { %755 = vmatpush.msra.mxu2 %v312_v4  ;;  %774 = vmatpush.msra.mxu3 %v329_v5  ;;  %v377_v4 = vld [vmem:[#allocation5 + $0x708] sm:$0xff]  ;;  %v394_v5 = vld [vmem:[#allocation5 + $0x790] sm:$0xff] }
  0x83   :  { %716 = vmatmul.f32.vlgmr.msra.gmra.mxu0 %v136_v6  ;;  %756 = vmatmul.f32.vlgmr.msra.gmra.mxu2 %v138_v7  ;;  %v344_v6 = vld [vmem:[#allocation5 + $0x600] sm:$0xff]  ;;  %v361_v7 = vld [vmem:[#allocation5 + $0x688] sm:$0xff] }
  0x84   :  { %780 = vmatpush.msrb.mxu0 %v359_v8  ;;  %820 = vmatpush.msrb.mxu2 %v391_v9  ;;  %v376_v8 = vld [vmem:[#allocation5 + $0x700] sm:$0xff]  ;;  %v393_v9 = vld [vmem:[#allocation5 + $0x788] sm:$0xff] }
  0x85   :  { %735 = vmatpush.msra.mxu1 %v296_v10  ;;  %775 = vmatpush.msra.mxu3 %v328_v11  ;;  %v140_v10 = vld [vmem:[#allocation2 + $0x60] sm:$0xff]  ;;  %v142_v11 = vld [vmem:[#allocation2 + $0x70] sm:$0xff] }
  0x86   :  { %736 = vmatmul.f32.vlgmr.msra.gmra.mxu1 %v137_v12  ;;  %776 = vmatmul.f32.vlgmr.msra.gmra.mxu3 %v139_v13  ;;  %v423_v12 = vld [vmem:[#allocation5 + $0x878] sm:$0xff] }
  0x87   :  { %781 = vmatpush.msrb.mxu0 %v358_v14  ;;  %800 = vmatpush.msrb.mxu1 %v375_v15  ;;  %v455_v13 = vld [vmem:[#allocation5 + $0x978] sm:$0xff]  ;;  %v360_v14 = vld [vmem:[#allocation5 + $0x680] sm:$0xff] }
  0x88   :  { %821 = vmatpush.msrb.mxu2 %v390_v16  ;;  %840 = vmatpush.msrb.mxu3 %v407_v17  ;;  %v392_v15 = vld [vmem:[#allocation5 + $0x780] sm:$0xff]  ;;  %v141_v16 = vld [vmem:[#allocation2 + $0x68] sm:$0xff]  ;;  %v143_v17 = vld [vmem:[#allocation2 + $0x78] sm:$0xff] }
  0x89   :  { %782 = vmatpush.msrb.mxu0 %v357_v18  ;;  %801 = vmatpush.msrb.mxu1 %v374_v19  ;;  %v422_v18 = vld [vmem:[#allocation5 + $0x870] sm:$0xff]  ;;  %v439_v19 = vld [vmem:[#allocation5 + $0x8f8] sm:$0xff] }
  0x8a   :  { %822 = vmatpush.msrb.mxu2 %v389_v20  ;;  %841 = vmatpush.msrb.mxu3 %v406_v21  ;;  %v454_v20 = vld [vmem:[#allocation5 + $0x970] sm:$0xff]  ;;  %v471_v21 = vld [vmem:[#allocation5 + $0x9f8] sm:$0xff] }
  0x8b   :  { %783 = vmatpush.msrb.mxu0 %v356_v22  ;;  %802 = vmatpush.msrb.mxu1 %v373_v23  ;;  %v421_v22 = vld [vmem:[#allocation5 + $0x868] sm:$0xff]  ;;  %v438_v23 = vld [vmem:[#allocation5 + $0x8f0] sm:$0xff] }
  0x8c   :  { %823 = vmatpush.msrb.mxu2 %v388_v24  ;;  %842 = vmatpush.msrb.mxu3 %v405_v25  ;;  %v453_v24 = vld [vmem:[#allocation5 + $0x968] sm:$0xff]  ;;  %v470_v25 = vld [vmem:[#allocation5 + $0x9f0] sm:$0xff] }
  0x8d   :  { %784 = vmatpush.msrb.mxu0 %v355_v26  ;;  %803 = vmatpush.msrb.mxu1 %v372_v27  ;;  %v420_v26 = vld [vmem:[#allocation5 + $0x860] sm:$0xff]  ;;  %v437_v27 = vld [vmem:[#allocation5 + $0x8e8] sm:$0xff] }
  0x8e   :  { %824 = vmatpush.msrb.mxu2 %v387_v28  ;;  %843 = vmatpush.msrb.mxu3 %v404_v29  ;;  %v452_v28 = vld [vmem:[#allocation5 + $0x960] sm:$0xff]  ;;  %v469_v29 = vld [vmem:[#allocation5 + $0x9e8] sm:$0xff] }
  0x8f   :  { %785 = vmatpush.msrb.mxu0 %v354_v30  ;;  %804 = vmatpush.msrb.mxu1 %v371_v31  ;;  %v419_v30 = vld [vmem:[#allocation5 + $0x858] sm:$0xff]  ;;  %v436_v31 = vld [vmem:[#allocation5 + $0x8e0] sm:$0xff] }
  0x90   :  { %825 = vmatpush.msrb.mxu2 %v386_v32  ;;  %844 = vmatpush.msrb.mxu3 %v403_v33  ;;  %v451_v32 = vld [vmem:[#allocation5 + $0x958] sm:$0xff]  ;;  %v468_v33 = vld [vmem:[#allocation5 + $0x9e0] sm:$0xff] }
  0x91   :  { %786 = vmatpush.msrb.mxu0 %v353_v34  ;;  %805 = vmatpush.msrb.mxu1 %v370_v35  ;;  %v418_v34 = vld [vmem:[#allocation5 + $0x850] sm:$0xff]  ;;  %v435_v35 = vld [vmem:[#allocation5 + $0x8d8] sm:$0xff] }
  0x92   :  { %826 = vmatpush.msrb.mxu2 %v385_v36  ;;  %845 = vmatpush.msrb.mxu3 %v402_v37  ;;  %v450_v36 = vld [vmem:[#allocation5 + $0x950] sm:$0xff]  ;;  %v467_v37 = vld [vmem:[#allocation5 + $0x9d8] sm:$0xff] }
  0x93   :  { %787 = vmatpush.msrb.mxu0 %v352_v38  ;;  %806 = vmatpush.msrb.mxu1 %v369_v39  ;;  %v417_v38 = vld [vmem:[#allocation5 + $0x848] sm:$0xff]  ;;  %v434_v39 = vld [vmem:[#allocation5 + $0x8d0] sm:$0xff] }
  0x94   :  { %827 = vmatpush.msrb.mxu2 %v384_v40  ;;  %846 = vmatpush.msrb.mxu3 %v401_v41  ;;  %v449_v40 = vld [vmem:[#allocation5 + $0x948] sm:$0xff]  ;;  %v466_v41 = vld [vmem:[#allocation5 + $0x9d0] sm:$0xff] }
  0x95   :  { %788 = vmatpush.msrb.mxu0 %v351_v42  ;;  %807 = vmatpush.msrb.mxu1 %v368_v43  ;;  %v416_v42 = vld [vmem:[#allocation5 + $0x840] sm:$0xff]  ;;  %v433_v43 = vld [vmem:[#allocation5 + $0x8c8] sm:$0xff] }
  0x96   :  { %828 = vmatpush.msrb.mxu2 %v383_v44  ;;  %847 = vmatpush.msrb.mxu3 %v400_v45  ;;  %v448_v44 = vld [vmem:[#allocation5 + $0x940] sm:$0xff]  ;;  %v465_v45 = vld [vmem:[#allocation5 + $0x9c8] sm:$0xff] }
  0x97   :  { %789 = vmatpush.msrb.mxu0 %v350_v46  ;;  %808 = vmatpush.msrb.mxu1 %v367_v47  ;;  %v415_v46 = vld [vmem:[#allocation5 + $0x838] sm:$0xff]  ;;  %v432_v47 = vld [vmem:[#allocation5 + $0x8c0] sm:$0xff] }
  0x98   :  { %829 = vmatpush.msrb.mxu2 %v382_v48  ;;  %848 = vmatpush.msrb.mxu3 %v399_v49  ;;  %v447_v48 = vld [vmem:[#allocation5 + $0x938] sm:$0xff]  ;;  %v464_v49 = vld [vmem:[#allocation5 + $0x9c0] sm:$0xff] }
  0x99   :  { %790 = vmatpush.msrb.mxu0 %v349_v50  ;;  %809 = vmatpush.msrb.mxu1 %v366_v51  ;;  %v414_v50 = vld [vmem:[#allocation5 + $0x830] sm:$0xff]  ;;  %v431_v51 = vld [vmem:[#allocation5 + $0x8b8] sm:$0xff] }
  0x9a   :  { %830 = vmatpush.msrb.mxu2 %v381_v52  ;;  %849 = vmatpush.msrb.mxu3 %v398_v53  ;;  %v446_v52 = vld [vmem:[#allocation5 + $0x930] sm:$0xff]  ;;  %v463_v53 = vld [vmem:[#allocation5 + $0x9b8] sm:$0xff] }
  0x9b   :  { %791 = vmatpush.msrb.mxu0 %v348_v54  ;;  %810 = vmatpush.msrb.mxu1 %v365_v55  ;;  %v413_v54 = vld [vmem:[#allocation5 + $0x828] sm:$0xff]  ;;  %v430_v55 = vld [vmem:[#allocation5 + $0x8b0] sm:$0xff] }
  0x9c   :  { %831 = vmatpush.msrb.mxu2 %v380_v56  ;;  %850 = vmatpush.msrb.mxu3 %v397_v57  ;;  %v445_v56 = vld [vmem:[#allocation5 + $0x928] sm:$0xff]  ;;  %v462_v57 = vld [vmem:[#allocation5 + $0x9b0] sm:$0xff] }
  0x9d   :  { %792 = vmatpush.msrb.mxu0 %v347_v58  ;;  %811 = vmatpush.msrb.mxu1 %v364_v59  ;;  %v412_v58 = vld [vmem:[#allocation5 + $0x820] sm:$0xff]  ;;  %v429_v59 = vld [vmem:[#allocation5 + $0x8a8] sm:$0xff] }
  0x9e   :  { %832 = vmatpush.msrb.mxu2 %v379_v60  ;;  %851 = vmatpush.msrb.mxu3 %v396_v61  ;;  %v444_v60 = vld [vmem:[#allocation5 + $0x920] sm:$0xff]  ;;  %v461_v61 = vld [vmem:[#allocation5 + $0x9a8] sm:$0xff] }
  0x9f   :  { %793 = vmatpush.msrb.mxu0 %v346_v62  ;;  %812 = vmatpush.msrb.mxu1 %v363_v63  ;;  %v411_v62 = vld [vmem:[#allocation5 + $0x818] sm:$0xff]  ;;  %v428_v63 = vld [vmem:[#allocation5 + $0x8a0] sm:$0xff] }
  0xa0   :  { %833 = vmatpush.msrb.mxu2 %v378_v0  ;;  %852 = vmatpush.msrb.mxu3 %v395_v1  ;;  %v443_v0 = vld [vmem:[#allocation5 + $0x918] sm:$0xff]  ;;  %v460_v1 = vld [vmem:[#allocation5 + $0x9a0] sm:$0xff] }
  0xa1   :  { %794 = vmatpush.msrb.mxu0 %v345_v2  ;;  %813 = vmatpush.msrb.mxu1 %v362_v3  ;;  %v410_v2 = vld [vmem:[#allocation5 + $0x810] sm:$0xff]  ;;  %v427_v3 = vld [vmem:[#allocation5 + $0x898] sm:$0xff] }
  0xa2   :  { %834 = vmatpush.msrb.mxu2 %v377_v4  ;;  %853 = vmatpush.msrb.mxu3 %v394_v5  ;;  %v442_v4 = vld [vmem:[#allocation5 + $0x910] sm:$0xff]  ;;  %v459_v5 = vld [vmem:[#allocation5 + $0x998] sm:$0xff] }
  0xa3   :  { %795 = vmatpush.msrb.mxu0 %v344_v6  ;;  %814 = vmatpush.msrb.mxu1 %v361_v7  ;;  %v409_v6 = vld [vmem:[#allocation5 + $0x808] sm:$0xff]  ;;  %v426_v7 = vld [vmem:[#allocation5 + $0x890] sm:$0xff] }
  0xa4   :  { %835 = vmatpush.msrb.mxu2 %v376_v8  ;;  %854 = vmatpush.msrb.mxu3 %v393_v9  ;;  %v441_v8 = vld [vmem:[#allocation5 + $0x908] sm:$0xff]  ;;  %v458_v9 = vld [vmem:[#allocation5 + $0x990] sm:$0xff] }
  0xa5   :  { %796 = vmatmul.f32.vlgmr.msrb.gmra.mxu0 %v140_v10  ;;  %836 = vmatmul.f32.vlgmr.msrb.gmra.mxu2 %v142_v11  ;;  %v408_v10 = vld [vmem:[#allocation5 + $0x800] sm:$0xff]  ;;  %v425_v11 = vld [vmem:[#allocation5 + $0x888] sm:$0xff] }
  0xa6   :  { %860 = vmatpush.msra.mxu0 %v423_v12  ;;  %900 = vmatpush.msra.mxu2 %v455_v13  ;;  %v440_v12 = vld [vmem:[#allocation5 + $0x900] sm:$0xff]  ;;  %v457_v13 = vld [vmem:[#allocation5 + $0x988] sm:$0xff] }
  0xa7   :  { %815 = vmatpush.msrb.mxu1 %v360_v14  ;;  %855 = vmatpush.msrb.mxu3 %v392_v15  ;;  %v144_v14 = vld [vmem:[#allocation2 + $0x80] sm:$0xff]  ;;  %v146_v15 = vld [vmem:[#allocation2 + $0x90] sm:$0xff] }
  0xa8   :  { %816 = vmatmul.f32.vlgmr.msrb.gmra.mxu1 %v141_v16  ;;  %856 = vmatmul.f32.vlgmr.msrb.gmra.mxu3 %v143_v17  ;;  %v487_v16 = vld [vmem:[#allocation5 + $0xa78] sm:$0xff] }
  0xa9   :  { %861 = vmatpush.msra.mxu0 %v422_v18  ;;  %880 = vmatpush.msra.mxu1 %v439_v19  ;;  %v519_v17 = vld [vmem:[#allocation5 + $0xb78] sm:$0xff]  ;;  %v424_v18 = vld [vmem:[#allocation5 + $0x880] sm:$0xff] }
  0xaa   :  { %901 = vmatpush.msra.mxu2 %v454_v20  ;;  %920 = vmatpush.msra.mxu3 %v471_v21  ;;  %v456_v19 = vld [vmem:[#allocation5 + $0x980] sm:$0xff]  ;;  %v145_v20 = vld [vmem:[#allocation2 + $0x88] sm:$0xff]  ;;  %v147_v21 = vld [vmem:[#allocation2 + $0x98] sm:$0xff] }
  0xab   :  { %862 = vmatpush.msra.mxu0 %v421_v22  ;;  %881 = vmatpush.msra.mxu1 %v438_v23  ;;  %v486_v22 = vld [vmem:[#allocation5 + $0xa70] sm:$0xff]  ;;  %v503_v23 = vld [vmem:[#allocation5 + $0xaf8] sm:$0xff] }
  0xac   :  { %902 = vmatpush.msra.mxu2 %v453_v24  ;;  %921 = vmatpush.msra.mxu3 %v470_v25  ;;  %v518_v24 = vld [vmem:[#allocation5 + $0xb70] sm:$0xff]  ;;  %v535_v25 = vld [vmem:[#allocation5 + $0xbf8] sm:$0xff] }
  0xad   :  { %863 = vmatpush.msra.mxu0 %v420_v26  ;;  %882 = vmatpush.msra.mxu1 %v437_v27  ;;  %v485_v26 = vld [vmem:[#allocation5 + $0xa68] sm:$0xff]  ;;  %v502_v27 = vld [vmem:[#allocation5 + $0xaf0] sm:$0xff] }
  0xae   :  { %903 = vmatpush.msra.mxu2 %v452_v28  ;;  %922 = vmatpush.msra.mxu3 %v469_v29  ;;  %v517_v28 = vld [vmem:[#allocation5 + $0xb68] sm:$0xff]  ;;  %v534_v29 = vld [vmem:[#allocation5 + $0xbf0] sm:$0xff] }
  0xaf   :  { %864 = vmatpush.msra.mxu0 %v419_v30  ;;  %883 = vmatpush.msra.mxu1 %v436_v31  ;;  %v484_v30 = vld [vmem:[#allocation5 + $0xa60] sm:$0xff]  ;;  %v501_v31 = vld [vmem:[#allocation5 + $0xae8] sm:$0xff] }
  0xb0   :  { %904 = vmatpush.msra.mxu2 %v451_v32  ;;  %923 = vmatpush.msra.mxu3 %v468_v33  ;;  %v516_v32 = vld [vmem:[#allocation5 + $0xb60] sm:$0xff]  ;;  %v533_v33 = vld [vmem:[#allocation5 + $0xbe8] sm:$0xff] }
  0xb1   :  { %865 = vmatpush.msra.mxu0 %v418_v34  ;;  %884 = vmatpush.msra.mxu1 %v435_v35  ;;  %v483_v34 = vld [vmem:[#allocation5 + $0xa58] sm:$0xff]  ;;  %v500_v35 = vld [vmem:[#allocation5 + $0xae0] sm:$0xff] }
  0xb2   :  { %905 = vmatpush.msra.mxu2 %v450_v36  ;;  %924 = vmatpush.msra.mxu3 %v467_v37  ;;  %v515_v36 = vld [vmem:[#allocation5 + $0xb58] sm:$0xff]  ;;  %v532_v37 = vld [vmem:[#allocation5 + $0xbe0] sm:$0xff] }
  0xb3   :  { %866 = vmatpush.msra.mxu0 %v417_v38  ;;  %885 = vmatpush.msra.mxu1 %v434_v39  ;;  %v482_v38 = vld [vmem:[#allocation5 + $0xa50] sm:$0xff]  ;;  %v499_v39 = vld [vmem:[#allocation5 + $0xad8] sm:$0xff] }
  0xb4   :  { %906 = vmatpush.msra.mxu2 %v449_v40  ;;  %925 = vmatpush.msra.mxu3 %v466_v41  ;;  %v514_v40 = vld [vmem:[#allocation5 + $0xb50] sm:$0xff]  ;;  %v531_v41 = vld [vmem:[#allocation5 + $0xbd8] sm:$0xff] }
  0xb5   :  { %867 = vmatpush.msra.mxu0 %v416_v42  ;;  %886 = vmatpush.msra.mxu1 %v433_v43  ;;  %v481_v42 = vld [vmem:[#allocation5 + $0xa48] sm:$0xff]  ;;  %v498_v43 = vld [vmem:[#allocation5 + $0xad0] sm:$0xff] }
  0xb6   :  { %907 = vmatpush.msra.mxu2 %v448_v44  ;;  %926 = vmatpush.msra.mxu3 %v465_v45  ;;  %v513_v44 = vld [vmem:[#allocation5 + $0xb48] sm:$0xff]  ;;  %v530_v45 = vld [vmem:[#allocation5 + $0xbd0] sm:$0xff] }
  0xb7   :  { %868 = vmatpush.msra.mxu0 %v415_v46  ;;  %887 = vmatpush.msra.mxu1 %v432_v47  ;;  %v480_v46 = vld [vmem:[#allocation5 + $0xa40] sm:$0xff]  ;;  %v497_v47 = vld [vmem:[#allocation5 + $0xac8] sm:$0xff] }
  0xb8   :  { %908 = vmatpush.msra.mxu2 %v447_v48  ;;  %927 = vmatpush.msra.mxu3 %v464_v49  ;;  %v512_v48 = vld [vmem:[#allocation5 + $0xb40] sm:$0xff]  ;;  %v529_v49 = vld [vmem:[#allocation5 + $0xbc8] sm:$0xff] }
  0xb9   :  { %869 = vmatpush.msra.mxu0 %v414_v50  ;;  %888 = vmatpush.msra.mxu1 %v431_v51  ;;  %v479_v50 = vld [vmem:[#allocation5 + $0xa38] sm:$0xff]  ;;  %v496_v51 = vld [vmem:[#allocation5 + $0xac0] sm:$0xff] }
  0xba   :  { %909 = vmatpush.msra.mxu2 %v446_v52  ;;  %928 = vmatpush.msra.mxu3 %v463_v53  ;;  %v511_v52 = vld [vmem:[#allocation5 + $0xb38] sm:$0xff]  ;;  %v528_v53 = vld [vmem:[#allocation5 + $0xbc0] sm:$0xff] }
  0xbb   :  { %870 = vmatpush.msra.mxu0 %v413_v54  ;;  %889 = vmatpush.msra.mxu1 %v430_v55  ;;  %v478_v54 = vld [vmem:[#allocation5 + $0xa30] sm:$0xff]  ;;  %v495_v55 = vld [vmem:[#allocation5 + $0xab8] sm:$0xff] }
  0xbc   :  { %910 = vmatpush.msra.mxu2 %v445_v56  ;;  %929 = vmatpush.msra.mxu3 %v462_v57  ;;  %v510_v56 = vld [vmem:[#allocation5 + $0xb30] sm:$0xff]  ;;  %v527_v57 = vld [vmem:[#allocation5 + $0xbb8] sm:$0xff] }
  0xbd   :  { %871 = vmatpush.msra.mxu0 %v412_v58  ;;  %890 = vmatpush.msra.mxu1 %v429_v59  ;;  %v477_v58 = vld [vmem:[#allocation5 + $0xa28] sm:$0xff]  ;;  %v494_v59 = vld [vmem:[#allocation5 + $0xab0] sm:$0xff] }
  0xbe   :  { %911 = vmatpush.msra.mxu2 %v444_v60  ;;  %930 = vmatpush.msra.mxu3 %v461_v61  ;;  %v509_v60 = vld [vmem:[#allocation5 + $0xb28] sm:$0xff]  ;;  %v526_v61 = vld [vmem:[#allocation5 + $0xbb0] sm:$0xff] }
  0xbf   :  { %872 = vmatpush.msra.mxu0 %v411_v62  ;;  %891 = vmatpush.msra.mxu1 %v428_v63  ;;  %v476_v62 = vld [vmem:[#allocation5 + $0xa20] sm:$0xff]  ;;  %v493_v63 = vld [vmem:[#allocation5 + $0xaa8] sm:$0xff] }
  0xc0   :  { %912 = vmatpush.msra.mxu2 %v443_v0  ;;  %931 = vmatpush.msra.mxu3 %v460_v1  ;;  %v508_v0 = vld [vmem:[#allocation5 + $0xb20] sm:$0xff]  ;;  %v525_v1 = vld [vmem:[#allocation5 + $0xba8] sm:$0xff] }
  0xc1   :  { %873 = vmatpush.msra.mxu0 %v410_v2  ;;  %892 = vmatpush.msra.mxu1 %v427_v3  ;;  %v475_v2 = vld [vmem:[#allocation5 + $0xa18] sm:$0xff]  ;;  %v492_v3 = vld [vmem:[#allocation5 + $0xaa0] sm:$0xff] }
  0xc2   :  { %913 = vmatpush.msra.mxu2 %v442_v4  ;;  %932 = vmatpush.msra.mxu3 %v459_v5  ;;  %v507_v4 = vld [vmem:[#allocation5 + $0xb18] sm:$0xff]  ;;  %v524_v5 = vld [vmem:[#allocation5 + $0xba0] sm:$0xff] }
  0xc3   :  { %874 = vmatpush.msra.mxu0 %v409_v6  ;;  %893 = vmatpush.msra.mxu1 %v426_v7  ;;  %v474_v6 = vld [vmem:[#allocation5 + $0xa10] sm:$0xff]  ;;  %v491_v7 = vld [vmem:[#allocation5 + $0xa98] sm:$0xff] }
  0xc4   :  { %914 = vmatpush.msra.mxu2 %v441_v8  ;;  %933 = vmatpush.msra.mxu3 %v458_v9  ;;  %v506_v8 = vld [vmem:[#allocation5 + $0xb10] sm:$0xff]  ;;  %v523_v9 = vld [vmem:[#allocation5 + $0xb98] sm:$0xff] }
  0xc5   :  { %875 = vmatpush.msra.mxu0 %v408_v10  ;;  %894 = vmatpush.msra.mxu1 %v425_v11  ;;  %v473_v10 = vld [vmem:[#allocation5 + $0xa08] sm:$0xff]  ;;  %v490_v11 = vld [vmem:[#allocation5 + $0xa90] sm:$0xff] }
  0xc6   :  { %915 = vmatpush.msra.mxu2 %v440_v12  ;;  %934 = vmatpush.msra.mxu3 %v457_v13  ;;  %v505_v12 = vld [vmem:[#allocation5 + $0xb08] sm:$0xff]  ;;  %v522_v13 = vld [vmem:[#allocation5 + $0xb90] sm:$0xff] }
  0xc7   :  { %876 = vmatmul.f32.vlgmr.msra.gmra.mxu0 %v144_v14  ;;  %916 = vmatmul.f32.vlgmr.msra.gmra.mxu2 %v146_v15  ;;  %v472_v14 = vld [vmem:[#allocation5 + $0xa00] sm:$0xff]  ;;  %v489_v15 = vld [vmem:[#allocation5 + $0xa88] sm:$0xff] }
  0xc8   :  { %940 = vmatpush.msrb.mxu0 %v487_v16  ;;  %980 = vmatpush.msrb.mxu2 %v519_v17  ;;  %v504_v16 = vld [vmem:[#allocation5 + $0xb00] sm:$0xff]  ;;  %v521_v17 = vld [vmem:[#allocation5 + $0xb88] sm:$0xff] }
  0xc9   :  { %895 = vmatpush.msra.mxu1 %v424_v18  ;;  %935 = vmatpush.msra.mxu3 %v456_v19  ;;  %v148_v18 = vld [vmem:[#allocation2 + $0xa0] sm:$0xff]  ;;  %v150_v19 = vld [vmem:[#allocation2 + $0xb0] sm:$0xff] }
  0xca   :  { %896 = vmatmul.f32.vlgmr.msra.gmra.mxu1 %v145_v20  ;;  %936 = vmatmul.f32.vlgmr.msra.gmra.mxu3 %v147_v21  ;;  %v488_v20 = vld [vmem:[#allocation5 + $0xa80] sm:$0xff] }
  0xcb   :  { %941 = vmatpush.msrb.mxu0 %v486_v22  ;;  %960 = vmatpush.msrb.mxu1 %v503_v23  ;;  %v520_v21 = vld [vmem:[#allocation5 + $0xb80] sm:$0xff]  ;;  %v149_v22 = vld [vmem:[#allocation2 + $0xa8] sm:$0xff]  ;;  %v151_v23 = vld [vmem:[#allocation2 + $0xb8] sm:$0xff] }
  0xcc   :  { %981 = vmatpush.msrb.mxu2 %v518_v24  ;;  %1000 = vmatpush.msrb.mxu3 %v535_v25  ;;  %v1142_v24 = vld [vmem:[#allocation7] ss:$0 sm:$0xff] }
  0xcd   :  { %942 = vmatpush.msrb.mxu0 %v485_v26  ;;  %961 = vmatpush.msrb.mxu1 %v502_v27 }
  0xce   :  { %982 = vmatpush.msrb.mxu2 %v517_v28  ;;  %1001 = vmatpush.msrb.mxu3 %v534_v29 }
  0xcf   :  { %943 = vmatpush.msrb.mxu0 %v484_v30  ;;  %962 = vmatpush.msrb.mxu1 %v501_v31 }
  0xd0   :  { %983 = vmatpush.msrb.mxu2 %v516_v32  ;;  %1002 = vmatpush.msrb.mxu3 %v533_v33  ;;  %v1036_v32 = vld [vmem:[#allocation8 + $0x78] sm:$0xff]  ;;  %v1035_v33 = vld [vmem:[#allocation8 + $0x70] sm:$0xff] }
  0xd1   :  { %944 = vmatpush.msrb.mxu0 %v483_v34  ;;  %963 = vmatpush.msrb.mxu1 %v500_v35  ;;  %v1034_v34 = vld [vmem:[#allocation8 + $0x68] sm:$0xff] }
  0xd2   :  { %984 = vmatpush.msrb.mxu2 %v515_v36  ;;  %1003 = vmatpush.msrb.mxu3 %v532_v37  ;;  %v1033_v37 = vld [vmem:[#allocation8 + $0x60] sm:$0xff] }
  0xd3   :  { %945 = vmatpush.msrb.mxu0 %v482_v38  ;;  %964 = vmatpush.msrb.mxu1 %v499_v39  ;;  %v1032_v38 = vld [vmem:[#allocation8 + $0x58] sm:$0xff] }
  0xd4   :  { %985 = vmatpush.msrb.mxu2 %v514_v40  ;;  %1004 = vmatpush.msrb.mxu3 %v531_v41  ;;  %v1031_v41 = vld [vmem:[#allocation8 + $0x50] sm:$0xff] }
  0xd5   :  { %946 = vmatpush.msrb.mxu0 %v481_v42  ;;  %965 = vmatpush.msrb.mxu1 %v498_v43  ;;  %v1030_v42 = vld [vmem:[#allocation8 + $0x48] sm:$0xff] }
  0xd6   :  { %986 = vmatpush.msrb.mxu2 %v513_v44  ;;  %1005 = vmatpush.msrb.mxu3 %v530_v45  ;;  %v1029_v45 = vld [vmem:[#allocation8 + $0x40] sm:$0xff] }
  0xd7   :  { %947 = vmatpush.msrb.mxu0 %v480_v46  ;;  %966 = vmatpush.msrb.mxu1 %v497_v47  ;;  %v1028_v46 = vld [vmem:[#allocation8 + $0x38] sm:$0xff] }
  0xd8   :  { %987 = vmatpush.msrb.mxu2 %v512_v48  ;;  %1006 = vmatpush.msrb.mxu3 %v529_v49 }
  0xd9   :  { %948 = vmatpush.msrb.mxu0 %v479_v50  ;;  %967 = vmatpush.msrb.mxu1 %v496_v51 }
  0xda   :  { %988 = vmatpush.msrb.mxu2 %v511_v52  ;;  %1007 = vmatpush.msrb.mxu3 %v528_v53  ;;  %v1027_v53 = vld [vmem:[#allocation8 + $0x30] sm:$0xff] }
  0xdb   :  { %949 = vmatpush.msrb.mxu0 %v478_v54  ;;  %968 = vmatpush.msrb.mxu1 %v495_v55 }
  0xdc   :  { %989 = vmatpush.msrb.mxu2 %v510_v56  ;;  %1008 = vmatpush.msrb.mxu3 %v527_v57  ;;  %v557_v25 = vpop.f32.mrf.mxu0  ;;  %v1026_v56 = vld [vmem:[#allocation8 + $0x28] sm:$0xff] }
  0xdd   :  { %950 = vmatpush.msrb.mxu0 %v477_v58  ;;  %969 = vmatpush.msrb.mxu1 %v494_v59  ;;  %v558_v26 = vadd.f32 %v1142_v24, %v557_v25  ;;  %v1025_v58 = vld [vmem:[#allocation8 + $0x20] sm:$0xff]  ;;  %v1068_v25 = vld [vmem:[#allocation11 + $0x30] sm:$0xff] }
  0xde   :  { %990 = vmatpush.msrb.mxu2 %v509_v60  ;;  %1009 = vmatpush.msrb.mxu3 %v526_v61  ;;  %v1024_v60 = vld [vmem:[#allocation8 + $0x18] sm:$0xff] }
  0xdf   :  { %951 = vmatpush.msrb.mxu0 %v476_v62  ;;  %970 = vmatpush.msrb.mxu1 %v493_v63  ;;  %v577_v27 = vpop.f32.mrf.mxu1  ;;  %v1023_v63 = vld [vmem:[#allocation8 + $0x10] sm:$0xff] }
  0xe0   :  { %991 = vmatpush.msrb.mxu2 %v508_v0  ;;  %1010 = vmatpush.msrb.mxu3 %v525_v1  ;;  %v578_v28 = vadd.f32 %v577_v27, %v558_v26  ;;  %v1022_v1 = vld [vmem:[#allocation8 + $0x8] sm:$0xff] }
  0xe1   :  { %952 = vmatpush.msrb.mxu0 %v475_v2  ;;  %971 = vmatpush.msrb.mxu1 %v492_v3  ;;  %v1021_v3 = vld [vmem:[#allocation8] sm:$0xff]  ;;  %v1067_v27 = vld [vmem:[#allocation11 + $0x28] sm:$0xff] }
  0xe2   :  { %992 = vmatpush.msrb.mxu2 %v507_v4  ;;  %1011 = vmatpush.msrb.mxu3 %v524_v5  ;;  %v597_v29 = vpop.f32.mrf.mxu2 }
  0xe3   :  { %953 = vmatpush.msrb.mxu0 %v474_v6  ;;  %972 = vmatpush.msrb.mxu1 %v491_v7  ;;  %v598_v30 = vadd.f32 %v597_v29, %v578_v28  ;;  %v1077_v6 = vld [vmem:[#allocation11 + $0x78] sm:$0xff]  ;;  %v1076_v7 = vld [vmem:[#allocation11 + $0x70] sm:$0xff] }
  0xe4   :  { %993 = vmatpush.msrb.mxu2 %v506_v8  ;;  %1012 = vmatpush.msrb.mxu3 %v523_v9  ;;  %v1075_v9 = vld [vmem:[#allocation11 + $0x68] sm:$0xff] }
  0xe5   :  { %954 = vmatpush.msrb.mxu0 %v473_v10  ;;  %973 = vmatpush.msrb.mxu1 %v490_v11  ;;  %v617_v31 = vpop.f32.mrf.mxu3  ;;  %v1074_v11 = vld [vmem:[#allocation11 + $0x60] sm:$0xff] }
  0xe6   :  { %994 = vmatpush.msrb.mxu2 %v505_v12  ;;  %1013 = vmatpush.msrb.mxu3 %v522_v13  ;;  %v618_v35 = vadd.f32 %v617_v31, %v598_v30  ;;  %v1066_v30 = vld [vmem:[#allocation11 + $0x20] sm:$0xff] }
  0xe7   :  { %955 = vmatpush.msrb.mxu0 %v472_v14  ;;  %974 = vmatpush.msrb.mxu1 %v489_v15  ;;  %v1073_v14 = vld [vmem:[#allocation11 + $0x58] sm:$0xff] }
  0xe8   :  { %995 = vmatpush.msrb.mxu2 %v504_v16  ;;  %1014 = vmatpush.msrb.mxu3 %v521_v17  ;;  %v637_v36 = vpop.f32.mrf.mxu0  ;;  %v1072_v16 = vld [vmem:[#allocation11 + $0x50] sm:$0xff] }
  0xe9   :  { %956 = vmatmul.f32.vlgmr.msrb.gmra.mxu0 %v148_v18  ;;  %996 = vmatmul.f32.vlgmr.msrb.gmra.mxu2 %v150_v19  ;;  %v638_v39 = vadd.f32 %v637_v36, %v618_v35  ;;  %v1071_v18 = vld [vmem:[#allocation11 + $0x48] sm:$0xff] }
  0xea   :  { %975 = vmatpush.msrb.mxu1 %v488_v20  ;;  %1015 = vmatpush.msrb.mxu3 %v520_v21  ;;  %v1070_v21 = vld [vmem:[#allocation11 + $0x40] sm:$0xff] }
  0xeb   :  { %976 = vmatmul.f32.vlgmr.msrb.gmra.mxu1 %v149_v22  ;;  %1016 = vmatmul.f32.vlgmr.msrb.gmra.mxu3 %v151_v23  ;;  %v657_v40 = vpop.f32.mrf.mxu1  ;;  %v1069_v23 = vld [vmem:[#allocation11 + $0x38] sm:$0xff] }
  0xec   :  { %1041 = vmatpush.msra.mxu0 %v1036_v32  ;;  %v658_v43 = vadd.f32 %v657_v40, %v638_v39  ;;  %v677_v44 = vpop.f32.mrf.mxu2  ;;  %1082 = vmatpush.msra.mxu1 %v1077_v6  ;;  %v1065_v32 = vld [vmem:[#allocation11 + $0x18] sm:$0xff]  ;;  %v1064_v39 = vld [vmem:[#allocation11 + $0x10] sm:$0xff]  ;;  %v1063_v40 = vld [vmem:[#allocation11 + $0x8] sm:$0xff] }
  0xee   :  { %1042 = vmatpush.msra.mxu0 %v1035_v33  ;;  %v678_v47 = vadd.f32 %v677_v44, %v658_v43  ;;  %1083 = vmatpush.msra.mxu1 %v1076_v7 }
  0xef   :  { %v697_v48 = vpop.f32.mrf.mxu3 }
  0xf0   :  { %1043 = vmatpush.msra.mxu0 %v1034_v34  ;;  %v698_v50 = vadd.f32 %v697_v48, %v678_v47  ;;  %1084 = vmatpush.msra.mxu1 %v1075_v9 }
  0xf2   :  { %1044 = vmatpush.msra.mxu0 %v1033_v37  ;;  %1085 = vmatpush.msra.mxu1 %v1074_v11 }
  0xf4   :  { %1045 = vmatpush.msra.mxu0 %v1032_v38  ;;  %1086 = vmatpush.msra.mxu1 %v1073_v14 }
  0xf6   :  { %1046 = vmatpush.msra.mxu0 %v1031_v41  ;;  %1087 = vmatpush.msra.mxu1 %v1072_v16  ;;  %v1062_v41 = vld [vmem:[#allocation11] sm:$0xff] }
  0xf8   :  { %1047 = vmatpush.msra.mxu0 %v1030_v42  ;;  %1088 = vmatpush.msra.mxu1 %v1071_v18  ;;  %v1143_v42 = vld [vmem:[#allocation10] ss:$0 sm:$0xff] }
  0xfa   :  { %1048 = vmatpush.msra.mxu0 %v1029_v45  ;;  %1089 = vmatpush.msra.mxu1 %v1070_v21 }
  0xfc   :  { %1049 = vmatpush.msra.mxu0 %v1028_v46  ;;  %1090 = vmatpush.msra.mxu1 %v1069_v23  ;;  %v1144_v46 = vld [vmem:[#allocation13] ss:$0 sm:$0xff] }
  0xfe   :  { %1050 = vmatpush.msra.mxu0 %v1027_v53  ;;  %1091 = vmatpush.msra.mxu1 %v1068_v25 }
 0x100   :  { %v717_v49 = vpop.f32.mrf.mxu0  ;;  %1051 = vmatpush.msra.mxu0 %v1026_v56  ;;  %1092 = vmatpush.msra.mxu1 %v1067_v27 }
 0x101   :  { %v718_v51 = vadd.f32 %v717_v49, %v698_v50 }
 0x102   :  { %1052 = vmatpush.msra.mxu0 %v1025_v58  ;;  %1093 = vmatpush.msra.mxu1 %v1066_v30 }
 0x103   :  { %v737_v52 = vpop.f32.mrf.mxu1 }
 0x104   :  { %v738_v55 = vadd.f32 %v737_v52, %v718_v51  ;;  %1053 = vmatpush.msra.mxu0 %v1024_v60  ;;  %1094 = vmatpush.msra.mxu1 %v1065_v32 }
 0x106   :  { %v757_v54 = vpop.f32.mrf.mxu2  ;;  %1054 = vmatpush.msra.mxu0 %v1023_v63  ;;  %1095 = vmatpush.msra.mxu1 %v1064_v39 }
 0x107   :  { %v758_v57 = vadd.f32 %v757_v54, %v738_v55 }
 0x108   :  { %1055 = vmatpush.msra.mxu0 %v1022_v1  ;;  %1096 = vmatpush.msra.mxu1 %v1063_v40 }
 0x109   :  { %v777_v59 = vpop.f32.mrf.mxu3 }
 0x10a   :  { %v778_v62 = vadd.f32 %v777_v59, %v758_v57  ;;  %1056 = vmatpush.msra.mxu0 %v1021_v3  ;;  %1097 = vmatpush.msra.mxu1 %v1062_v41 }
 0x122   :  { %v797_v61 = vpop.f32.mrf.mxu0 }
 0x123   :  { %v798_v0 = vadd.f32 %v797_v61, %v778_v62 }
 0x125   :  { %v817_v2 = vpop.f32.mrf.mxu1 }
 0x126   :  { %v818_v5 = vadd.f32 %v817_v2, %v798_v0 }
 0x128   :  { %v837_v4 = vpop.f32.mrf.mxu2 }
 0x129   :  { %v838_v8 = vadd.f32 %v837_v4, %v818_v5 }
 0x12b   :  { %v857_v10 = vpop.f32.mrf.mxu3 }
 0x12c   :  { %v858_v13 = vadd.f32 %v857_v10, %v838_v8 }
 0x144   :  { %v877_v12 = vpop.f32.mrf.mxu0 }
 0x145   :  { %v878_v15 = vadd.f32 %v877_v12, %v858_v13 }
 0x147   :  { %v897_v17 = vpop.f32.mrf.mxu1 }
 0x148   :  { %v898_v20 = vadd.f32 %v897_v17, %v878_v15 }
 0x14a   :  { %v917_v19 = vpop.f32.mrf.mxu2 }
 0x14b   :  { %v918_v22 = vadd.f32 %v917_v19, %v898_v20 }
 0x14d   :  { %v937_v24 = vpop.f32.mrf.mxu3 }
 0x14e   :  { %v938_v26 = vadd.f32 %v937_v24, %v918_v22 }
 0x166   :  { %v957_v28 = vpop.f32.mrf.mxu0 }
 0x167   :  { %v958_v29 = vadd.f32 %v957_v28, %v938_v26 }
 0x168   :  { %v977_v31 = vpop.f32.mrf.mxu1 }
 0x169   :  { %v978_v33 = vadd.f32 %v977_v31, %v958_v29 }
 0x16c   :  { %v997_v34 = vpop.f32.mrf.mxu2 }
 0x16d   :  { %v998_v35 = vadd.f32 %v997_v34, %v978_v33 }
 0x16e   :  { %v1017_v36 = vpop.f32.mrf.mxu3 }
 0x16f   :  { %v1018_v37 = vadd.f32 %v1017_v36, %v998_v35 }
 0x171   :  { %v1020_v38 = vmax.f32 %v1018_v37, 0.0 }
 0x173   :  { %1057 = vmatmul.f32.vlgmr.msra.gmra.mxu0 %v1020_v38 }
 0x1f0   :  { %v1058_v43 = vpop.f32.mrf.mxu0 }
 0x1f1   :  { %v1059_v44 = vadd.f32 %v1143_v42, %v1058_v43 }
 0x1f3   :  { %v1061_v45 = vmax.f32 %v1059_v44, 0.0 }
 0x1f5   :  { %1098 = vmatmul.f32.vlgmr.msra.gmra.mxu1 %v1061_v45 }
 0x272   :  { %v1099_v47 = vpop.f32.mrf.mxu1 }
 0x273   :  { %v1100_v48 = vadd.f32 %v1144_v46, %v1099_v47 }
 0x275   :  { %1102 = vmax.xlane.f32.xlu0 %v1100_v48 }
 0x2e8   :  { %v1103_v49 = vpop.xlane.xlu0 %1102 }
 0x2e9   :  { %v1104_v50 = vsub.f32 %v1100_v48, %v1103_v49 }
 0x2eb   :  { %v1105_v51 = vmul.f32 1.442695, %v1104_v50 }
 0x2ed   :  { %1145 = vpow2.f32 %v1105_v51 }
 0x2f3   :  { %v1146_v52 = vpop.eup %1145 }
 0x2f4   :  { %1107 = vadd.xlane.f32.xlu0 %v1146_v52 }
 0x367   :  { %v1108_v53 = vpop.xlane.xlu0 %1107 }
 0x368   :  { %1147 = vrcp.f32 %v1108_v53 }
 0x36e   :  { %v1148_v54 = vpop.eup %1147 }
 0x36f   :  { %v1110_v55 = vmul.f32 %v1148_v54, %v1146_v52 }
 0x371   :  { %1111 = vst [vmem:[#allocation14] sm:$0xff] %v1110_v55 }
 0x372   :  { %1122 = dma.vmem_to_hbm [thread:$0]  %s1118_s6, 128, %s1120_s12, [#allocation4]  }
 0x373   :  { %1349 = dma.done.wait [#allocation4], 128  }
 0x374   :  { %1350 = vsyncadd [#allocation4], 4294967168 }
 0x375   :  { %1127 = vsyncpa [#allocation3], 1 }
 0x376   :  { %1128 = vsyncpa [#allocation6], 1 }
 0x377   :  { %1129 = vsyncpa [#allocation9], 1 }
 0x378   :  { %1130 = vsyncpa [#allocation12], 1 }
 0x379   :  { %1131 = vsyncpa [#allocation4], 1 }

</bundles_post_ra>
